<compile_context>
chip_gen: v7x
topology: tpu7x:2x2x1
jax: 0.10.0
libtpu: 0.0.40
codegen_flags: <defaults>
</compile_context>

<pallas_src>
import math

import jax
import jax.numpy as jnp
import numpy as np
from jax import lax
from jax.experimental import pallas as pl
from jax.experimental.pallas import tpu as pltpu  # noqa: F401  (TPU backend parity)

# ---- model dims (small, consistent with the module) ----
B = 2        # batch
S = 8        # sequence length
D = 32       # d_model (layer.size)
H = 4        # attention heads
DK = D // H  # head dim
FF = 64      # feed-forward hidden
N_LAYERS = 2
EPS = 1e-6
NEG_INF = -1e9

R = H * B * S            # 64 stacked attention rows: index = h*(B*S) + b*S + t

# ---- weight-slab layout (all tiles are (32, 32) f32) ----
TILES_PER_LAYER = 18
T_WQ, T_WK, T_WV = 0, 4, 8            # + h            head-placed projection weights
T_WO = 12                              #                full output projection
T_W1A, T_W1B = 13, 14                  #                FFN w1 lane halves
T_W2A, T_W2B = 15, 16                  #                FFN w2 row halves
T_VEC = 17                             #                per-layer vectors (rows below)
V_LN1G, V_LN1B, V_LN2G, V_LN2B = 0, 1, 2, 3
V_BO, V_B1A, V_B1B, V_B2 = 4, 5, 6, 7
V_BQ, V_BK, V_BV = 8, 12, 16           # + h            head-placed q/k/v biases


def _layer_norm(x, g, b):
    # x: (rows, D); g, b: (1, D). Matches F.layer_norm (biased variance).
    mu = jnp.mean(x, axis=-1, keepdims=True)
    var = jnp.mean((x - mu) ** 2, axis=-1, keepdims=True)
    return (x - mu) * lax.rsqrt(var + EPS) * g + b


def _ab_t(a, b):
    # a @ b.T without materializing the transpose (contract dim 1 of both).
    return lax.dot_general(a, b, (((1,), (1,)), ((), ())),
                           preferred_element_type=jnp.float32)


def encoder_kernel(x_ref, bias_ref, w_ref, out_ref):
    """Entire encoder forward (N_LAYERS x EncoderLayer + final LayerNorm) in one kernel.

    x_ref   : (B*S, D)          activations, batch folded into sublanes
    bias_ref: (R, R)            precomputed additive score bias (block-diag + key padding)
    w_ref   : (L*18+1, 32, 32)  weight slab, see pack_params()
    """
    x = x_ref[...]                      # (16, 32)
    bias = bias_ref[...]                # (64, 64), hoisted once for the whole forward

    for l in range(N_LAYERS):           # layers unrolled in-kernel
        base = l * TILES_PER_LAYER
        vec = w_ref[base + T_VEC]       # (32, 32): rows hold the per-layer vectors

        # ---- sublayer 1: pre-norm block-diagonal multi-head self-attention ----
        xn = _layer_norm(x, vec[V_LN1G:V_LN1G + 1], vec[V_LN1B:V_LN1B + 1])

        # Per-head projections with head-placed lanes (other lanes exactly 0),
        # stacked along sublanes -> (R, D).  Weight tiles are leading-axis
        # indexed (free); no activation lane slicing anywhere.  1/sqrt(dk) is
        # already folded into the Q weights/biases.
        q = jnp.concatenate(
            [jnp.dot(xn, w_ref[base + T_WQ + h], preferred_element_type=jnp.float32)
             + vec[V_BQ + h:V_BQ + h + 1] for h in range(H)], axis=0)
        k = jnp.concatenate(
            [jnp.dot(xn, w_ref[base + T_WK + h], preferred_element_type=jnp.float32)
             + vec[V_BK + h:V_BK + h + 1] for h in range(H)], axis=0)
        v = jnp.concatenate(
            [jnp.dot(xn, w_ref[base + T_WV + h], preferred_element_type=jnp.float32)
             + vec[V_BV + h:V_BV + h + 1] for h in range(H)], axis=0)

        # ONE scores matmul for all (head, batch) pairs: cross-head lane blocks
        # are disjoint so off-head products are exactly 0; cross-batch blocks
        # and padded keys are killed by the precomputed additive bias.
        s = _ab_t(q, k) + bias                              # (64, 64)
        s = s - jnp.max(s, axis=-1, keepdims=True)
        p = jnp.exp(s)
        p = p / jnp.sum(p, axis=-1, keepdims=True)          # exact softmax (fixes 1e-3 misses)

        ctx = jnp.dot(p, v, preferred_element_type=jnp.float32)   # (64, 32), head-placed lanes

        # Head -> d_model: heads live in disjoint lane blocks, so summing the H
        # sublane blocks IS the head concat; then a single stacked-wo matmul.
        attn = ctx[0 * B * S:1 * B * S]
        for h in range(1, H):
            attn = attn + ctx[h * B * S:(h + 1) * B * S]            # (16, 32)
        x = x + jnp.dot(attn, w_ref[base + T_WO],
                        preferred_element_type=jnp.float32) + vec[V_BO:V_BO + 1]

        # ---- sublayer 2: pre-norm position-wise feed-forward + residual ----
        xn2 = _layer_norm(x, vec[V_LN2G:V_LN2G + 1], vec[V_LN2B:V_LN2B + 1])
        ha = jnp.maximum(jnp.dot(xn2, w_ref[base + T_W1A],
                                 preferred_element_type=jnp.float32)
                         + vec[V_B1A:V_B1A + 1], 0.0)
        hb = jnp.maximum(jnp.dot(xn2, w_ref[base + T_W1B],
                                 preferred_element_type=jnp.float32)
                         + vec[V_B1B:V_B1B + 1], 0.0)
        x = (x
             + jnp.dot(ha, w_ref[base + T_W2A], preferred_element_type=jnp.float32)
             + jnp.dot(hb, w_ref[base + T_W2B], preferred_element_type=jnp.float32)
             + vec[V_B2:V_B2 + 1])

    # ---- final LayerNorm ----
    fin = w_ref[N_LAYERS * TILES_PER_LAYER]
    out_ref[...] = _layer_norm(x, fin[0:1], fin[1:2])


def pack_params(params):
    """Pack every weight/bias into ONE (L*18+1, 32, 32) f32 slab of lane-aligned tiles."""
    scale = 1.0 / math.sqrt(DK)
    tiles = []

    def placed(w, h):  # keep only head-h columns, zero the rest (done once, at pack time)
        out = jnp.zeros((w.shape[0], D), jnp.float32)
        return out.at[:, h * DK:(h + 1) * DK].set(w[:, h * DK:(h + 1) * DK])

    for lp in params["layers"]:
        wq, bq = lp["wq"] * scale, lp["bq"] * scale          # fold 1/sqrt(dk) into Q
        for h in range(H):
            tiles.append(placed(wq, h))
        for h in range(H):
            tiles.append(placed(lp["wk"], h))
        for h in range(H):
            tiles.append(placed(lp["wv"], h))
        tiles.append(lp["wo"])                                # (32, 32)
        tiles.append(lp["w1"][:, :D])                         # FFN split into 32-lane tiles
        tiles.append(lp["w1"][:, D:])
        tiles.append(lp["w2"][:D, :])
        tiles.append(lp["w2"][D:, :])
        rows = [lp["ln1_g"], lp["ln1_b"], lp["ln2_g"], lp["ln2_b"],
                lp["bo"], lp["b1"][:, :D], lp["b1"][:, D:], lp["b2"]]
        rows += [placed(bq, h) for h in range(H)]
        rows += [placed(lp["bk"], h) for h in range(H)]
        rows += [placed(lp["bv"], h) for h in range(H)]
        rows.append(jnp.zeros((D - len(rows), D), jnp.float32))
        tiles.append(jnp.concatenate(rows, axis=0))           # (32, 32) "vec" tile
    tiles.append(jnp.concatenate(
        [params["norm_g"], params["norm_b"],
         jnp.zeros((D - 2, D), jnp.float32)], axis=0))         # final-norm tile
    return jnp.stack(tiles)                                    # (L*18+1, 32, 32)


@jax.jit
def encoder_forward(x, mask, wslab):
    x2 = x.reshape(B * S, D)            # fold batch into sublanes (free view in XLA)
    # Additive score bias at the final (R, R) score shape, built once per call:
    # row/col index = h*(B*S) + b*S + t ; attend iff same (head, batch) block AND
    # the key position is not padded.
    key_ok = jnp.tile(mask.reshape(B * S), (H,))               # (R,)
    gid = jnp.arange(R, dtype=jnp.int32) // S                  # group id = h*B + b
    same = gid[:, None] == gid[None, :]
    bias = jnp.where(same & (key_ok[None, :] > 0), 0.0, NEG_INF).astype(jnp.float32)
    out = pl.pallas_call(
        encoder_kernel,
        out_shape=jax.ShapeDtypeStruct((B * S, D), jnp.float32),
        # No grid / BlockSpecs: 3 whole-array VMEM operands (<1 MiB total) ->
        # one launch, minimal DMA descriptors.  A parallel grid / BlockSpec
        # tiling only pays off once B/S/D are scaled (v7x two-TC, VMEM limits).
    )(x2, bias, wslab)
    return out.reshape(B, S, D)


# ---- pure-JAX reference (same math as the PyTorch module, eval mode) ----
def _ln_ref(x, g, b):
    mu = jnp.mean(x, axis=-1, keepdims=True)
    var = jnp.mean((x - mu) ** 2, axis=-1, keepdims=True)
    return (x - mu) / jnp.sqrt(var + EPS) * g + b


def encoder_ref(x, mask, params):
    for lp in params["layers"]:
        xn = _ln_ref(x, lp["ln1_g"], lp["ln1_b"])
        q = xn @ lp["wq"] + lp["bq"]
        k = xn @ lp["wk"] + lp["bk"]
        v = xn @ lp["wv"] + lp["bv"]
        qh = q.reshape(B, S, H, DK).transpose(0, 2, 1, 3)
        kh = k.reshape(B, S, H, DK).transpose(0, 2, 1, 3)
        vh = v.reshape(B, S, H, DK).transpose(0, 2, 1, 3)
        s = jnp.einsum("bhqd,bhkd->bhqk", qh, kh) / math.sqrt(DK)
        s = jnp.where(mask[:, None, :, :] > 0, s, -1e9)
        p = jax.nn.softmax(s, axis=-1)
        o = jnp.einsum("bhqk,bhkd->bhqd", p, vh).transpose(0, 2, 1, 3).reshape(B, S, D)
        x = x + (o @ lp["wo"] + lp["bo"])
        xn2 = _ln_ref(x, lp["ln2_g"], lp["ln2_b"])
        x = x + (jnp.maximum(xn2 @ lp["w1"] + lp["b1"], 0.0) @ lp["w2"] + lp["b2"])
    return _ln_ref(x, params["norm_g"], params["norm_b"])


def init_params(key):
    def dense(key, fan_in, fan_out):
        k1, k2 = jax.random.split(key)
        lim = 1.0 / math.sqrt(fan_in)
        w = jax.random.uniform(k1, (fan_in, fan_out), jnp.float32, -lim, lim)
        b = jax.random.uniform(k2, (1, fan_out), jnp.float32, -lim, lim)
        return w, b

    layers = []
    for _ in range(N_LAYERS):
        key, *ks = jax.random.split(key, 7)
        wq, bq = dense(ks[0], D, D)
        wk, bk = dense(ks[1], D, D)
        wv, bv = dense(ks[2], D, D)
        wo, bo = dense(ks[3], D, D)
        w1, b1 = dense(ks[4], D, FF)
        w2, b2 = dense(ks[5], FF, D)
        layers.append(dict(
            ln1_g=jnp.ones((1, D), jnp.float32), ln1_b=jnp.zeros((1, D), jnp.float32),
            wq=wq, bq=bq, wk=wk, bk=bk, wv=wv, bv=bv, wo=wo, bo=bo,
            ln2_g=jnp.ones((1, D), jnp.float32), ln2_b=jnp.zeros((1, D), jnp.float32),
            w1=w1, b1=b1, w2=w2, b2=b2))
    return dict(layers=layers,
                norm_g=jnp.ones((1, D), jnp.float32),
                norm_b=jnp.zeros((1, D), jnp.float32)), key


if __name__ == "__main__":
    key = jax.random.PRNGKey(0)
    params, key = init_params(key)
    wslab = pack_params(params)

    key, kx = jax.random.split(key)
    x = jax.random.normal(kx, (B, S, D), jnp.float32)
    # source padding mask: batch 0 attends to all 8 tokens, batch 1 to first 6
    lens = jnp.array([8, 6])
    mask = (jnp.arange(S)[None, :] < lens[:, None]).astype(jnp.float32)[:, None, :]  # (B,1,S)

    out = encoder_forward(x, mask, wslab)
    out = jax.block_until_ready(out)

    ref = encoder_ref(x, mask, params)
    # Exact softmax division now -> typical error ~1e-5; 1e-3 gives safe margin
    # for MXU f32 accumulation-order differences on hardware.
    np.testing.assert_allclose(np.asarray(out), np.asarray(ref), rtol=1e-3, atol=1e-3)

    print("KERNEL_OK")
</pallas_src>

<mosaic_0001>
module attributes {stable_mosaic.version = 11 : i64} {
  func.func @encoder_kernel(%arg0: memref<16x32xf32, #tpu.memory_space<vmem>>, %arg1: memref<64x64xf32, #tpu.memory_space<vmem>>, %arg2: memref<37x32x32xf32, #tpu.memory_space<vmem>>, %arg3: memref<16x32xf32, #tpu.memory_space<vmem>>) attributes {dimension_semantics = [], scalar_prefetch = 0 : i64, scratch_operands = 0 : i64, tpu.core_type = #tpu.core_type<tc>} {
    %c0 = arith.constant 0 : index
    %c0_0 = arith.constant 0 : index
    %0 = vector.load %arg0[%c0, %c0_0] : memref<16x32xf32, #tpu.memory_space<vmem>>, vector<16x32xf32>
    %c0_1 = arith.constant 0 : index
    %c0_2 = arith.constant 0 : index
    %1 = vector.load %arg1[%c0_1, %c0_2] : memref<64x64xf32, #tpu.memory_space<vmem>>, vector<64x64xf32>
    %c17 = arith.constant 17 : index
    %c0_3 = arith.constant 0 : index
    %c0_4 = arith.constant 0 : index
    %2 = vector.load %arg2[%c17, %c0_3, %c0_4] : memref<37x32x32xf32, #tpu.memory_space<vmem>>, vector<1x32x32xf32>
    %3 = vector.shape_cast %2 : vector<1x32x32xf32> to vector<32x32xf32>
    %4 = vector.extract_strided_slice %3 {offsets = [0, 0], sizes = [1, 32], strides = [1, 1]} : vector<32x32xf32> to vector<1x32xf32>
    %5 = vector.extract_strided_slice %3 {offsets = [1, 0], sizes = [1, 32], strides = [1, 1]} : vector<32x32xf32> to vector<1x32xf32>
    %cst = arith.constant dense<0.000000e+00> : vector<16xf32>
    %6 = vector.multi_reduction <add>, %0, %cst [1] : vector<16x32xf32> to vector<16xf32>
    %7 = vector.shape_cast %6 : vector<16xf32> to vector<16x1xf32>
    %cst_5 = arith.constant 3.200000e+01 : f32
    %8 = vector.broadcast %cst_5 : f32 to vector<16x1xf32>
    %9 = arith.divf %7, %8 : vector<16x1xf32>
    %10 = vector.broadcast %9 : vector<16x1xf32> to vector<16x32xf32>
    %11 = arith.subf %0, %10 : vector<16x32xf32>
    %12 = arith.mulf %11, %11 : vector<16x32xf32>
    %cst_6 = arith.constant dense<0.000000e+00> : vector<16xf32>
    %13 = vector.multi_reduction <add>, %12, %cst_6 [1] : vector<16x32xf32> to vector<16xf32>
    %14 = vector.shape_cast %13 : vector<16xf32> to vector<16x1xf32>
    %cst_7 = arith.constant 3.200000e+01 : f32
    %15 = vector.broadcast %cst_7 : f32 to vector<16x1xf32>
    %16 = arith.divf %14, %15 : vector<16x1xf32>
    %17 = vector.broadcast %9 : vector<16x1xf32> to vector<16x32xf32>
    %18 = arith.subf %0, %17 : vector<16x32xf32>
    %cst_8 = arith.constant 9.99999997E-7 : f32
    %19 = vector.broadcast %cst_8 : f32 to vector<16x1xf32>
    %20 = arith.addf %16, %19 : vector<16x1xf32>
    %21 = math.rsqrt %20 : vector<16x1xf32>
    %22 = vector.broadcast %21 : vector<16x1xf32> to vector<16x32xf32>
    %23 = arith.mulf %18, %22 : vector<16x32xf32>
    %24 = vector.broadcast %4 : vector<1x32xf32> to vector<16x32xf32>
    %25 = arith.mulf %23, %24 : vector<16x32xf32>
    %26 = vector.broadcast %5 : vector<1x32xf32> to vector<16x32xf32>
    %27 = arith.addf %25, %26 : vector<16x32xf32>
    %c0_9 = arith.constant 0 : index
    %c0_10 = arith.constant 0 : index
    %c0_11 = arith.constant 0 : index
    %28 = vector.load %arg2[%c0_9, %c0_10, %c0_11] : memref<37x32x32xf32, #tpu.memory_space<vmem>>, vector<1x32x32xf32>
    %29 = vector.shape_cast %28 : vector<1x32x32xf32> to vector<32x32xf32>
    %cst_12 = arith.constant dense<0.000000e+00> : vector<16x32xf32>
    %30 = tpu.matmul %27, %29, %cst_12 {dimension_numbers = #tpu.dot_dimension_numbers<[1], [0], [0], [1], [0, 0, 1, 1], [], []>} : vector<16x32xf32>, vector<32x32xf32>, vector<16x32xf32> -> vector<16x32xf32>
    %31 = vector.extract_strided_slice %3 {offsets = [8, 0], sizes = [1, 32], strides = [1, 1]} : vector<32x32xf32> to vector<1x32xf32>
    %32 = vector.broadcast %31 : vector<1x32xf32> to vector<16x32xf32>
    %33 = arith.addf %30, %32 : vector<16x32xf32>
    %c1 = arith.constant 1 : index
    %c0_13 = arith.constant 0 : index
    %c0_14 = arith.constant 0 : index
    %34 = vector.load %arg2[%c1, %c0_13, %c0_14] : memref<37x32x32xf32, #tpu.memory_space<vmem>>, vector<1x32x32xf32>
    %35 = vector.shape_cast %34 : vector<1x32x32xf32> to vector<32x32xf32>
    %cst_15 = arith.constant dense<0.000000e+00> : vector<16x32xf32>
    %36 = tpu.matmul %27, %35, %cst_15 {dimension_numbers = #tpu.dot_dimension_numbers<[1], [0], [0], [1], [0, 0, 1, 1], [], []>} : vector<16x32xf32>, vector<32x32xf32>, vector<16x32xf32> -> vector<16x32xf32>
    %37 = vector.extract_strided_slice %3 {offsets = [9, 0], sizes = [1, 32], strides = [1, 1]} : vector<32x32xf32> to vector<1x32xf32>
    %38 = vector.broadcast %37 : vector<1x32xf32> to vector<16x32xf32>
    %39 = arith.addf %36, %38 : vector<16x32xf32>
    %c2 = arith.constant 2 : index
    %c0_16 = arith.constant 0 : index
    %c0_17 = arith.constant 0 : index
    %40 = vector.load %arg2[%c2, %c0_16, %c0_17] : memref<37x32x32xf32, #tpu.memory_space<vmem>>, vector<1x32x32xf32>
    %41 = vector.shape_cast %40 : vector<1x32x32xf32> to vector<32x32xf32>
    %cst_18 = arith.constant dense<0.000000e+00> : vector<16x32xf32>
    %42 = tpu.matmul %27, %41, %cst_18 {dimension_numbers = #tpu.dot_dimension_numbers<[1], [0], [0], [1], [0, 0, 1, 1], [], []>} : vector<16x32xf32>, vector<32x32xf32>, vector<16x32xf32> -> vector<16x32xf32>
    %43 = vector.extract_strided_slice %3 {offsets = [10, 0], sizes = [1, 32], strides = [1, 1]} : vector<32x32xf32> to vector<1x32xf32>
    %44 = vector.broadcast %43 : vector<1x32xf32> to vector<16x32xf32>
    %45 = arith.addf %42, %44 : vector<16x32xf32>
    %c3 = arith.constant 3 : index
    %c0_19 = arith.constant 0 : index
    %c0_20 = arith.constant 0 : index
    %46 = vector.load %arg2[%c3, %c0_19, %c0_20] : memref<37x32x32xf32, #tpu.memory_space<vmem>>, vector<1x32x32xf32>
    %47 = vector.shape_cast %46 : vector<1x32x32xf32> to vector<32x32xf32>
    %cst_21 = arith.constant dense<0.000000e+00> : vector<16x32xf32>
    %48 = tpu.matmul %27, %47, %cst_21 {dimension_numbers = #tpu.dot_dimension_numbers<[1], [0], [0], [1], [0, 0, 1, 1], [], []>} : vector<16x32xf32>, vector<32x32xf32>, vector<16x32xf32> -> vector<16x32xf32>
    %49 = vector.extract_strided_slice %3 {offsets = [11, 0], sizes = [1, 32], strides = [1, 1]} : vector<32x32xf32> to vector<1x32xf32>
    %50 = vector.broadcast %49 : vector<1x32xf32> to vector<16x32xf32>
    %51 = arith.addf %48, %50 : vector<16x32xf32>
    %52 = tpu.concatenate %33, %39, %45, %51 in 0 : vector<16x32xf32>, vector<16x32xf32>, vector<16x32xf32>, vector<16x32xf32> -> vector<64x32xf32>
    %c4 = arith.constant 4 : index
    %c0_22 = arith.constant 0 : index
    %c0_23 = arith.constant 0 : index
    %53 = vector.load %arg2[%c4, %c0_22, %c0_23] : memref<37x32x32xf32, #tpu.memory_space<vmem>>, vector<1x32x32xf32>
    %54 = vector.shape_cast %53 : vector<1x32x32xf32> to vector<32x32xf32>
    %cst_24 = arith.constant dense<0.000000e+00> : vector<16x32xf32>
    %55 = tpu.matmul %27, %54, %cst_24 {dimension_numbers = #tpu.dot_dimension_numbers<[1], [0], [0], [1], [0, 0, 1, 1], [], []>} : vector<16x32xf32>, vector<32x32xf32>, vector<16x32xf32> -> vector<16x32xf32>
    %56 = vector.extract_strided_slice %3 {offsets = [12, 0], sizes = [1, 32], strides = [1, 1]} : vector<32x32xf32> to vector<1x32xf32>
    %57 = vector.broadcast %56 : vector<1x32xf32> to vector<16x32xf32>
    %58 = arith.addf %55, %57 : vector<16x32xf32>
    %c5 = arith.constant 5 : index
    %c0_25 = arith.constant 0 : index
    %c0_26 = arith.constant 0 : index
    %59 = vector.load %arg2[%c5, %c0_25, %c0_26] : memref<37x32x32xf32, #tpu.memory_space<vmem>>, vector<1x32x32xf32>
    %60 = vector.shape_cast %59 : vector<1x32x32xf32> to vector<32x32xf32>
    %cst_27 = arith.constant dense<0.000000e+00> : vector<16x32xf32>
    %61 = tpu.matmul %27, %60, %cst_27 {dimension_numbers = #tpu.dot_dimension_numbers<[1], [0], [0], [1], [0, 0, 1, 1], [], []>} : vector<16x32xf32>, vector<32x32xf32>, vector<16x32xf32> -> vector<16x32xf32>
    %62 = vector.extract_strided_slice %3 {offsets = [13, 0], sizes = [1, 32], strides = [1, 1]} : vector<32x32xf32> to vector<1x32xf32>
    %63 = vector.broadcast %62 : vector<1x32xf32> to vector<16x32xf32>
    %64 = arith.addf %61, %63 : vector<16x32xf32>
    %c6 = arith.constant 6 : index
    %c0_28 = arith.constant 0 : index
    %c0_29 = arith.constant 0 : index
    %65 = vector.load %arg2[%c6, %c0_28, %c0_29] : memref<37x32x32xf32, #tpu.memory_space<vmem>>, vector<1x32x32xf32>
    %66 = vector.shape_cast %65 : vector<1x32x32xf32> to vector<32x32xf32>
    %cst_30 = arith.constant dense<0.000000e+00> : vector<16x32xf32>
    %67 = tpu.matmul %27, %66, %cst_30 {dimension_numbers = #tpu.dot_dimension_numbers<[1], [0], [0], [1], [0, 0, 1, 1], [], []>} : vector<16x32xf32>, vector<32x32xf32>, vector<16x32xf32> -> vector<16x32xf32>
    %68 = vector.extract_strided_slice %3 {offsets = [14, 0], sizes = [1, 32], strides = [1, 1]} : vector<32x32xf32> to vector<1x32xf32>
    %69 = vector.broadcast %68 : vector<1x32xf32> to vector<16x32xf32>
    %70 = arith.addf %67, %69 : vector<16x32xf32>
    %c7 = arith.constant 7 : index
    %c0_31 = arith.constant 0 : index
    %c0_32 = arith.constant 0 : index
    %71 = vector.load %arg2[%c7, %c0_31, %c0_32] : memref<37x32x32xf32, #tpu.memory_space<vmem>>, vector<1x32x32xf32>
    %72 = vector.shape_cast %71 : vector<1x32x32xf32> to vector<32x32xf32>
    %cst_33 = arith.constant dense<0.000000e+00> : vector<16x32xf32>
    %73 = tpu.matmul %27, %72, %cst_33 {dimension_numbers = #tpu.dot_dimension_numbers<[1], [0], [0], [1], [0, 0, 1, 1], [], []>} : vector<16x32xf32>, vector<32x32xf32>, vector<16x32xf32> -> vector<16x32xf32>
    %74 = vector.extract_strided_slice %3 {offsets = [15, 0], sizes = [1, 32], strides = [1, 1]} : vector<32x32xf32> to vector<1x32xf32>
    %75 = vector.broadcast %74 : vector<1x32xf32> to vector<16x32xf32>
    %76 = arith.addf %73, %75 : vector<16x32xf32>
    %77 = tpu.concatenate %58, %64, %70, %76 in 0 : vector<16x32xf32>, vector<16x32xf32>, vector<16x32xf32>, vector<16x32xf32> -> vector<64x32xf32>
    %c8 = arith.constant 8 : index
    %c0_34 = arith.constant 0 : index
    %c0_35 = arith.constant 0 : index
    %78 = vector.load %arg2[%c8, %c0_34, %c0_35] : memref<37x32x32xf32, #tpu.memory_space<vmem>>, vector<1x32x32xf32>
    %79 = vector.shape_cast %78 : vector<1x32x32xf32> to vector<32x32xf32>
    %cst_36 = arith.constant dense<0.000000e+00> : vector<16x32xf32>
    %80 = tpu.matmul %27, %79, %cst_36 {dimension_numbers = #tpu.dot_dimension_numbers<[1], [0], [0], [1], [0, 0, 1, 1], [], []>} : vector<16x32xf32>, vector<32x32xf32>, vector<16x32xf32> -> vector<16x32xf32>
    %81 = vector.extract_strided_slice %3 {offsets = [16, 0], sizes = [1, 32], strides = [1, 1]} : vector<32x32xf32> to vector<1x32xf32>
    %82 = vector.broadcast %81 : vector<1x32xf32> to vector<16x32xf32>
    %83 = arith.addf %80, %82 : vector<16x32xf32>
    %c9 = arith.constant 9 : index
    %c0_37 = arith.constant 0 : index
    %c0_38 = arith.constant 0 : index
    %84 = vector.load %arg2[%c9, %c0_37, %c0_38] : memref<37x32x32xf32, #tpu.memory_space<vmem>>, vector<1x32x32xf32>
    %85 = vector.shape_cast %84 : vector<1x32x32xf32> to vector<32x32xf32>
    %cst_39 = arith.constant dense<0.000000e+00> : vector<16x32xf32>
    %86 = tpu.matmul %27, %85, %cst_39 {dimension_numbers = #tpu.dot_dimension_numbers<[1], [0], [0], [1], [0, 0, 1, 1], [], []>} : vector<16x32xf32>, vector<32x32xf32>, vector<16x32xf32> -> vector<16x32xf32>
    %87 = vector.extract_strided_slice %3 {offsets = [17, 0], sizes = [1, 32], strides = [1, 1]} : vector<32x32xf32> to vector<1x32xf32>
    %88 = vector.broadcast %87 : vector<1x32xf32> to vector<16x32xf32>
    %89 = arith.addf %86, %88 : vector<16x32xf32>
    %c10 = arith.constant 10 : index
    %c0_40 = arith.constant 0 : index
    %c0_41 = arith.constant 0 : index
    %90 = vector.load %arg2[%c10, %c0_40, %c0_41] : memref<37x32x32xf32, #tpu.memory_space<vmem>>, vector<1x32x32xf32>
    %91 = vector.shape_cast %90 : vector<1x32x32xf32> to vector<32x32xf32>
    %cst_42 = arith.constant dense<0.000000e+00> : vector<16x32xf32>
    %92 = tpu.matmul %27, %91, %cst_42 {dimension_numbers = #tpu.dot_dimension_numbers<[1], [0], [0], [1], [0, 0, 1, 1], [], []>} : vector<16x32xf32>, vector<32x32xf32>, vector<16x32xf32> -> vector<16x32xf32>
    %93 = vector.extract_strided_slice %3 {offsets = [18, 0], sizes = [1, 32], strides = [1, 1]} : vector<32x32xf32> to vector<1x32xf32>
    %94 = vector.broadcast %93 : vector<1x32xf32> to vector<16x32xf32>
    %95 = arith.addf %92, %94 : vector<16x32xf32>
    %c11 = arith.constant 11 : index
    %c0_43 = arith.constant 0 : index
    %c0_44 = arith.constant 0 : index
    %96 = vector.load %arg2[%c11, %c0_43, %c0_44] : memref<37x32x32xf32, #tpu.memory_space<vmem>>, vector<1x32x32xf32>
    %97 = vector.shape_cast %96 : vector<1x32x32xf32> to vector<32x32xf32>
    %cst_45 = arith.constant dense<0.000000e+00> : vector<16x32xf32>
    %98 = tpu.matmul %27, %97, %cst_45 {dimension_numbers = #tpu.dot_dimension_numbers<[1], [0], [0], [1], [0, 0, 1, 1], [], []>} : vector<16x32xf32>, vector<32x32xf32>, vector<16x32xf32> -> vector<16x32xf32>
    %99 = vector.extract_strided_slice %3 {offsets = [19, 0], sizes = [1, 32], strides = [1, 1]} : vector<32x32xf32> to vector<1x32xf32>
    %100 = vector.broadcast %99 : vector<1x32xf32> to vector<16x32xf32>
    %101 = arith.addf %98, %100 : vector<16x32xf32>
    %102 = tpu.concatenate %83, %89, %95, %101 in 0 : vector<16x32xf32>, vector<16x32xf32>, vector<16x32xf32>, vector<16x32xf32> -> vector<64x32xf32>
    %cst_46 = arith.constant dense<0.000000e+00> : vector<64x64xf32>
    %103 = tpu.matmul %52, %77, %cst_46 {dimension_numbers = #tpu.dot_dimension_numbers<[1], [1], [0], [0], [0, 0, 1, 0], [], []>} : vector<64x32xf32>, vector<64x32xf32>, vector<64x64xf32> -> vector<64x64xf32>
    %104 = arith.addf %103, %1 : vector<64x64xf32>
    %cst_47 = arith.constant dense<0xFF800000> : vector<64xf32>
    %105 = vector.multi_reduction <maximumf>, %104, %cst_47 [1] : vector<64x64xf32> to vector<64xf32>
    %106 = vector.shape_cast %105 : vector<64xf32> to vector<64x1xf32>
    %107 = vector.broadcast %106 : vector<64x1xf32> to vector<64x64xf32>
    %108 = arith.subf %104, %107 : vector<64x64xf32>
    %109 = math.exp %108 : vector<64x64xf32>
    %cst_48 = arith.constant dense<0.000000e+00> : vector<64xf32>
    %110 = vector.multi_reduction <add>, %109, %cst_48 [1] : vector<64x64xf32> to vector<64xf32>
    %111 = vector.shape_cast %110 : vector<64xf32> to vector<64x1xf32>
    %112 = vector.broadcast %111 : vector<64x1xf32> to vector<64x64xf32>
    %113 = arith.divf %109, %112 : vector<64x64xf32>
    %cst_49 = arith.constant dense<0.000000e+00> : vector<64x32xf32>
    %114 = tpu.matmul %113, %102, %cst_49 {dimension_numbers = #tpu.dot_dimension_numbers<[1], [0], [0], [1], [0, 0, 1, 1], [], []>} : vector<64x64xf32>, vector<64x32xf32>, vector<64x32xf32> -> vector<64x32xf32>
    %115 = vector.extract_strided_slice %114 {offsets = [0, 0], sizes = [16, 32], strides = [1, 1]} : vector<64x32xf32> to vector<16x32xf32>
    %116 = vector.extract_strided_slice %114 {offsets = [16, 0], sizes = [16, 32], strides = [1, 1]} : vector<64x32xf32> to vector<16x32xf32>
    %117 = arith.addf %115, %116 : vector<16x32xf32>
    %118 = vector.extract_strided_slice %114 {offsets = [32, 0], sizes = [16, 32], strides = [1, 1]} : vector<64x32xf32> to vector<16x32xf32>
    %119 = arith.addf %117, %118 : vector<16x32xf32>
    %120 = vector.extract_strided_slice %114 {offsets = [48, 0], sizes = [16, 32], strides = [1, 1]} : vector<64x32xf32> to vector<16x32xf32>
    %121 = arith.addf %119, %120 : vector<16x32xf32>
    %c12 = arith.constant 12 : index
    %c0_50 = arith.constant 0 : index
    %c0_51 = arith.constant 0 : index
    %122 = vector.load %arg2[%c12, %c0_50, %c0_51] : memref<37x32x32xf32, #tpu.memory_space<vmem>>, vector<1x32x32xf32>
    %123 = vector.shape_cast %122 : vector<1x32x32xf32> to vector<32x32xf32>
    %cst_52 = arith.constant dense<0.000000e+00> : vector<16x32xf32>
    %124 = tpu.matmul %121, %123, %cst_52 {dimension_numbers = #tpu.dot_dimension_numbers<[1], [0], [0], [1], [0, 0, 1, 1], [], []>} : vector<16x32xf32>, vector<32x32xf32>, vector<16x32xf32> -> vector<16x32xf32>
    %125 = arith.addf %0, %124 : vector<16x32xf32>
    %126 = vector.extract_strided_slice %3 {offsets = [4, 0], sizes = [1, 32], strides = [1, 1]} : vector<32x32xf32> to vector<1x32xf32>
    %127 = vector.broadcast %126 : vector<1x32xf32> to vector<16x32xf32>
    %128 = arith.addf %125, %127 : vector<16x32xf32>
    %129 = vector.extract_strided_slice %3 {offsets = [2, 0], sizes = [1, 32], strides = [1, 1]} : vector<32x32xf32> to vector<1x32xf32>
    %130 = vector.extract_strided_slice %3 {offsets = [3, 0], sizes = [1, 32], strides = [1, 1]} : vector<32x32xf32> to vector<1x32xf32>
    %cst_53 = arith.constant dense<0.000000e+00> : vector<16xf32>
    %131 = vector.multi_reduction <add>, %128, %cst_53 [1] : vector<16x32xf32> to vector<16xf32>
    %132 = vector.shape_cast %131 : vector<16xf32> to vector<16x1xf32>
    %cst_54 = arith.constant 3.200000e+01 : f32
    %133 = vector.broadcast %cst_54 : f32 to vector<16x1xf32>
    %134 = arith.divf %132, %133 : vector<16x1xf32>
    %135 = vector.broadcast %134 : vector<16x1xf32> to vector<16x32xf32>
    %136 = arith.subf %128, %135 : vector<16x32xf32>
    %137 = arith.mulf %136, %136 : vector<16x32xf32>
    %cst_55 = arith.constant dense<0.000000e+00> : vector<16xf32>
    %138 = vector.multi_reduction <add>, %137, %cst_55 [1] : vector<16x32xf32> to vector<16xf32>
    %139 = vector.shape_cast %138 : vector<16xf32> to vector<16x1xf32>
    %cst_56 = arith.constant 3.200000e+01 : f32
    %140 = vector.broadcast %cst_56 : f32 to vector<16x1xf32>
    %141 = arith.divf %139, %140 : vector<16x1xf32>
    %142 = vector.broadcast %134 : vector<16x1xf32> to vector<16x32xf32>
    %143 = arith.subf %128, %142 : vector<16x32xf32>
    %cst_57 = arith.constant 9.99999997E-7 : f32
    %144 = vector.broadcast %cst_57 : f32 to vector<16x1xf32>
    %145 = arith.addf %141, %144 : vector<16x1xf32>
    %146 = math.rsqrt %145 : vector<16x1xf32>
    %147 = vector.broadcast %146 : vector<16x1xf32> to vector<16x32xf32>
    %148 = arith.mulf %143, %147 : vector<16x32xf32>
    %149 = vector.broadcast %129 : vector<1x32xf32> to vector<16x32xf32>
    %150 = arith.mulf %148, %149 : vector<16x32xf32>
    %151 = vector.broadcast %130 : vector<1x32xf32> to vector<16x32xf32>
    %152 = arith.addf %150, %151 : vector<16x32xf32>
    %c13 = arith.constant 13 : index
    %c0_58 = arith.constant 0 : index
    %c0_59 = arith.constant 0 : index
    %153 = vector.load %arg2[%c13, %c0_58, %c0_59] : memref<37x32x32xf32, #tpu.memory_space<vmem>>, vector<1x32x32xf32>
    %154 = vector.shape_cast %153 : vector<1x32x32xf32> to vector<32x32xf32>
    %cst_60 = arith.constant dense<0.000000e+00> : vector<16x32xf32>
    %155 = tpu.matmul %152, %154, %cst_60 {dimension_numbers = #tpu.dot_dimension_numbers<[1], [0], [0], [1], [0, 0, 1, 1], [], []>} : vector<16x32xf32>, vector<32x32xf32>, vector<16x32xf32> -> vector<16x32xf32>
    %156 = vector.extract_strided_slice %3 {offsets = [5, 0], sizes = [1, 32], strides = [1, 1]} : vector<32x32xf32> to vector<1x32xf32>
    %157 = vector.broadcast %156 : vector<1x32xf32> to vector<16x32xf32>
    %158 = arith.addf %155, %157 : vector<16x32xf32>
    %cst_61 = arith.constant 0.000000e+00 : f32
    %159 = vector.broadcast %cst_61 : f32 to vector<16x32xf32>
    %160 = arith.maximumf %158, %159 : vector<16x32xf32>
    %c14 = arith.constant 14 : index
    %c0_62 = arith.constant 0 : index
    %c0_63 = arith.constant 0 : index
    %161 = vector.load %arg2[%c14, %c0_62, %c0_63] : memref<37x32x32xf32, #tpu.memory_space<vmem>>, vector<1x32x32xf32>
    %162 = vector.shape_cast %161 : vector<1x32x32xf32> to vector<32x32xf32>
    %cst_64 = arith.constant dense<0.000000e+00> : vector<16x32xf32>
    %163 = tpu.matmul %152, %162, %cst_64 {dimension_numbers = #tpu.dot_dimension_numbers<[1], [0], [0], [1], [0, 0, 1, 1], [], []>} : vector<16x32xf32>, vector<32x32xf32>, vector<16x32xf32> -> vector<16x32xf32>
    %164 = vector.extract_strided_slice %3 {offsets = [6, 0], sizes = [1, 32], strides = [1, 1]} : vector<32x32xf32> to vector<1x32xf32>
    %165 = vector.broadcast %164 : vector<1x32xf32> to vector<16x32xf32>
    %166 = arith.addf %163, %165 : vector<16x32xf32>
    %cst_65 = arith.constant 0.000000e+00 : f32
    %167 = vector.broadcast %cst_65 : f32 to vector<16x32xf32>
    %168 = arith.maximumf %166, %167 : vector<16x32xf32>
    %c15 = arith.constant 15 : index
    %c0_66 = arith.constant 0 : index
    %c0_67 = arith.constant 0 : index
    %169 = vector.load %arg2[%c15, %c0_66, %c0_67] : memref<37x32x32xf32, #tpu.memory_space<vmem>>, vector<1x32x32xf32>
    %170 = vector.shape_cast %169 : vector<1x32x32xf32> to vector<32x32xf32>
    %cst_68 = arith.constant dense<0.000000e+00> : vector<16x32xf32>
    %171 = tpu.matmul %160, %170, %cst_68 {dimension_numbers = #tpu.dot_dimension_numbers<[1], [0], [0], [1], [0, 0, 1, 1], [], []>} : vector<16x32xf32>, vector<32x32xf32>, vector<16x32xf32> -> vector<16x32xf32>
    %172 = arith.addf %128, %171 : vector<16x32xf32>
    %c16 = arith.constant 16 : index
    %c0_69 = arith.constant 0 : index
    %c0_70 = arith.constant 0 : index
    %173 = vector.load %arg2[%c16, %c0_69, %c0_70] : memref<37x32x32xf32, #tpu.memory_space<vmem>>, vector<1x32x32xf32>
    %174 = vector.shape_cast %173 : vector<1x32x32xf32> to vector<32x32xf32>
    %cst_71 = arith.constant dense<0.000000e+00> : vector<16x32xf32>
    %175 = tpu.matmul %168, %174, %cst_71 {dimension_numbers = #tpu.dot_dimension_numbers<[1], [0], [0], [1], [0, 0, 1, 1], [], []>} : vector<16x32xf32>, vector<32x32xf32>, vector<16x32xf32> -> vector<16x32xf32>
    %176 = arith.addf %172, %175 : vector<16x32xf32>
    %177 = vector.extract_strided_slice %3 {offsets = [7, 0], sizes = [1, 32], strides = [1, 1]} : vector<32x32xf32> to vector<1x32xf32>
    %178 = vector.broadcast %177 : vector<1x32xf32> to vector<16x32xf32>
    %179 = arith.addf %176, %178 : vector<16x32xf32>
    %c35 = arith.constant 35 : index
    %c0_72 = arith.constant 0 : index
    %c0_73 = arith.constant 0 : index
    %180 = vector.load %arg2[%c35, %c0_72, %c0_73] : memref<37x32x32xf32, #tpu.memory_space<vmem>>, vector<1x32x32xf32>
    %181 = vector.shape_cast %180 : vector<1x32x32xf32> to vector<32x32xf32>
    %182 = vector.extract_strided_slice %181 {offsets = [0, 0], sizes = [1, 32], strides = [1, 1]} : vector<32x32xf32> to vector<1x32xf32>
    %183 = vector.extract_strided_slice %181 {offsets = [1, 0], sizes = [1, 32], strides = [1, 1]} : vector<32x32xf32> to vector<1x32xf32>
    %cst_74 = arith.constant dense<0.000000e+00> : vector<16xf32>
    %184 = vector.multi_reduction <add>, %179, %cst_74 [1] : vector<16x32xf32> to vector<16xf32>
    %185 = vector.shape_cast %184 : vector<16xf32> to vector<16x1xf32>
    %cst_75 = arith.constant 3.200000e+01 : f32
    %186 = vector.broadcast %cst_75 : f32 to vector<16x1xf32>
    %187 = arith.divf %185, %186 : vector<16x1xf32>
    %188 = vector.broadcast %187 : vector<16x1xf32> to vector<16x32xf32>
    %189 = arith.subf %179, %188 : vector<16x32xf32>
    %190 = arith.mulf %189, %189 : vector<16x32xf32>
    %cst_76 = arith.constant dense<0.000000e+00> : vector<16xf32>
    %191 = vector.multi_reduction <add>, %190, %cst_76 [1] : vector<16x32xf32> to vector<16xf32>
    %192 = vector.shape_cast %191 : vector<16xf32> to vector<16x1xf32>
    %cst_77 = arith.constant 3.200000e+01 : f32
    %193 = vector.broadcast %cst_77 : f32 to vector<16x1xf32>
    %194 = arith.divf %192, %193 : vector<16x1xf32>
    %195 = vector.broadcast %187 : vector<16x1xf32> to vector<16x32xf32>
    %196 = arith.subf %179, %195 : vector<16x32xf32>
    %cst_78 = arith.constant 9.99999997E-7 : f32
    %197 = vector.broadcast %cst_78 : f32 to vector<16x1xf32>
    %198 = arith.addf %194, %197 : vector<16x1xf32>
    %199 = math.rsqrt %198 : vector<16x1xf32>
    %200 = vector.broadcast %199 : vector<16x1xf32> to vector<16x32xf32>
    %201 = arith.mulf %196, %200 : vector<16x32xf32>
    %202 = vector.broadcast %182 : vector<1x32xf32> to vector<16x32xf32>
    %203 = arith.mulf %201, %202 : vector<16x32xf32>
    %204 = vector.broadcast %183 : vector<1x32xf32> to vector<16x32xf32>
    %205 = arith.addf %203, %204 : vector<16x32xf32>
    %c18 = arith.constant 18 : index
    %c0_79 = arith.constant 0 : index
    %c0_80 = arith.constant 0 : index
    %206 = vector.load %arg2[%c18, %c0_79, %c0_80] : memref<37x32x32xf32, #tpu.memory_space<vmem>>, vector<1x32x32xf32>
    %207 = vector.shape_cast %206 : vector<1x32x32xf32> to vector<32x32xf32>
    %cst_81 = arith.constant dense<0.000000e+00> : vector<16x32xf32>
    %208 = tpu.matmul %205, %207, %cst_81 {dimension_numbers = #tpu.dot_dimension_numbers<[1], [0], [0], [1], [0, 0, 1, 1], [], []>} : vector<16x32xf32>, vector<32x32xf32>, vector<16x32xf32> -> vector<16x32xf32>
    %209 = vector.extract_strided_slice %181 {offsets = [8, 0], sizes = [1, 32], strides = [1, 1]} : vector<32x32xf32> to vector<1x32xf32>
    %210 = vector.broadcast %209 : vector<1x32xf32> to vector<16x32xf32>
    %211 = arith.addf %208, %210 : vector<16x32xf32>
    %c19 = arith.constant 19 : index
    %c0_82 = arith.constant 0 : index
    %c0_83 = arith.constant 0 : index
    %212 = vector.load %arg2[%c19, %c0_82, %c0_83] : memref<37x32x32xf32, #tpu.memory_space<vmem>>, vector<1x32x32xf32>
    %213 = vector.shape_cast %212 : vector<1x32x32xf32> to vector<32x32xf32>
    %cst_84 = arith.constant dense<0.000000e+00> : vector<16x32xf32>
    %214 = tpu.matmul %205, %213, %cst_84 {dimension_numbers = #tpu.dot_dimension_numbers<[1], [0], [0], [1], [0, 0, 1, 1], [], []>} : vector<16x32xf32>, vector<32x32xf32>, vector<16x32xf32> -> vector<16x32xf32>
    %215 = vector.extract_strided_slice %181 {offsets = [9, 0], sizes = [1, 32], strides = [1, 1]} : vector<32x32xf32> to vector<1x32xf32>
    %216 = vector.broadcast %215 : vector<1x32xf32> to vector<16x32xf32>
    %217 = arith.addf %214, %216 : vector<16x32xf32>
    %c20 = arith.constant 20 : index
    %c0_85 = arith.constant 0 : index
    %c0_86 = arith.constant 0 : index
    %218 = vector.load %arg2[%c20, %c0_85, %c0_86] : memref<37x32x32xf32, #tpu.memory_space<vmem>>, vector<1x32x32xf32>
    %219 = vector.shape_cast %218 : vector<1x32x32xf32> to vector<32x32xf32>
    %cst_87 = arith.constant dense<0.000000e+00> : vector<16x32xf32>
    %220 = tpu.matmul %205, %219, %cst_87 {dimension_numbers = #tpu.dot_dimension_numbers<[1], [0], [0], [1], [0, 0, 1, 1], [], []>} : vector<16x32xf32>, vector<32x32xf32>, vector<16x32xf32> -> vector<16x32xf32>
    %221 = vector.extract_strided_slice %181 {offsets = [10, 0], sizes = [1, 32], strides = [1, 1]} : vector<32x32xf32> to vector<1x32xf32>
    %222 = vector.broadcast %221 : vector<1x32xf32> to vector<16x32xf32>
    %223 = arith.addf %220, %222 : vector<16x32xf32>
    %c21 = arith.constant 21 : index
    %c0_88 = arith.constant 0 : index
    %c0_89 = arith.constant 0 : index
    %224 = vector.load %arg2[%c21, %c0_88, %c0_89] : memref<37x32x32xf32, #tpu.memory_space<vmem>>, vector<1x32x32xf32>
    %225 = vector.shape_cast %224 : vector<1x32x32xf32> to vector<32x32xf32>
    %cst_90 = arith.constant dense<0.000000e+00> : vector<16x32xf32>
    %226 = tpu.matmul %205, %225, %cst_90 {dimension_numbers = #tpu.dot_dimension_numbers<[1], [0], [0], [1], [0, 0, 1, 1], [], []>} : vector<16x32xf32>, vector<32x32xf32>, vector<16x32xf32> -> vector<16x32xf32>
    %227 = vector.extract_strided_slice %181 {offsets = [11, 0], sizes = [1, 32], strides = [1, 1]} : vector<32x32xf32> to vector<1x32xf32>
    %228 = vector.broadcast %227 : vector<1x32xf32> to vector<16x32xf32>
    %229 = arith.addf %226, %228 : vector<16x32xf32>
    %230 = tpu.concatenate %211, %217, %223, %229 in 0 : vector<16x32xf32>, vector<16x32xf32>, vector<16x32xf32>, vector<16x32xf32> -> vector<64x32xf32>
    %c22 = arith.constant 22 : index
    %c0_91 = arith.constant 0 : index
    %c0_92 = arith.constant 0 : index
    %231 = vector.load %arg2[%c22, %c0_91, %c0_92] : memref<37x32x32xf32, #tpu.memory_space<vmem>>, vector<1x32x32xf32>
    %232 = vector.shape_cast %231 : vector<1x32x32xf32> to vector<32x32xf32>
    %cst_93 = arith.constant dense<0.000000e+00> : vector<16x32xf32>
    %233 = tpu.matmul %205, %232, %cst_93 {dimension_numbers = #tpu.dot_dimension_numbers<[1], [0], [0], [1], [0, 0, 1, 1], [], []>} : vector<16x32xf32>, vector<32x32xf32>, vector<16x32xf32> -> vector<16x32xf32>
    %234 = vector.extract_strided_slice %181 {offsets = [12, 0], sizes = [1, 32], strides = [1, 1]} : vector<32x32xf32> to vector<1x32xf32>
    %235 = vector.broadcast %234 : vector<1x32xf32> to vector<16x32xf32>
    %236 = arith.addf %233, %235 : vector<16x32xf32>
    %c23 = arith.constant 23 : index
    %c0_94 = arith.constant 0 : index
    %c0_95 = arith.constant 0 : index
    %237 = vector.load %arg2[%c23, %c0_94, %c0_95] : memref<37x32x32xf32, #tpu.memory_space<vmem>>, vector<1x32x32xf32>
    %238 = vector.shape_cast %237 : vector<1x32x32xf32> to vector<32x32xf32>
    %cst_96 = arith.constant dense<0.000000e+00> : vector<16x32xf32>
    %239 = tpu.matmul %205, %238, %cst_96 {dimension_numbers = #tpu.dot_dimension_numbers<[1], [0], [0], [1], [0, 0, 1, 1], [], []>} : vector<16x32xf32>, vector<32x32xf32>, vector<16x32xf32> -> vector<16x32xf32>
    %240 = vector.extract_strided_slice %181 {offsets = [13, 0], sizes = [1, 32], strides = [1, 1]} : vector<32x32xf32> to vector<1x32xf32>
    %241 = vector.broadcast %240 : vector<1x32xf32> to vector<16x32xf32>
    %242 = arith.addf %239, %241 : vector<16x32xf32>
    %c24 = arith.constant 24 : index
    %c0_97 = arith.constant 0 : index
    %c0_98 = arith.constant 0 : index
    %243 = vector.load %arg2[%c24, %c0_97, %c0_98] : memref<37x32x32xf32, #tpu.memory_space<vmem>>, vector<1x32x32xf32>
    %244 = vector.shape_cast %243 : vector<1x32x32xf32> to vector<32x32xf32>
    %cst_99 = arith.constant dense<0.000000e+00> : vector<16x32xf32>
    %245 = tpu.matmul %205, %244, %cst_99 {dimension_numbers = #tpu.dot_dimension_numbers<[1], [0], [0], [1], [0, 0, 1, 1], [], []>} : vector<16x32xf32>, vector<32x32xf32>, vector<16x32xf32> -> vector<16x32xf32>
    %246 = vector.extract_strided_slice %181 {offsets = [14, 0], sizes = [1, 32], strides = [1, 1]} : vector<32x32xf32> to vector<1x32xf32>
    %247 = vector.broadcast %246 : vector<1x32xf32> to vector<16x32xf32>
    %248 = arith.addf %245, %247 : vector<16x32xf32>
    %c25 = arith.constant 25 : index
    %c0_100 = arith.constant 0 : index
    %c0_101 = arith.constant 0 : index
    %249 = vector.load %arg2[%c25, %c0_100, %c0_101] : memref<37x32x32xf32, #tpu.memory_space<vmem>>, vector<1x32x32xf32>
    %250 = vector.shape_cast %249 : vector<1x32x32xf32> to vector<32x32xf32>
    %cst_102 = arith.constant dense<0.000000e+00> : vector<16x32xf32>
    %251 = tpu.matmul %205, %250, %cst_102 {dimension_numbers = #tpu.dot_dimension_numbers<[1], [0], [0], [1], [0, 0, 1, 1], [], []>} : vector<16x32xf32>, vector<32x32xf32>, vector<16x32xf32> -> vector<16x32xf32>
    %252 = vector.extract_strided_slice %181 {offsets = [15, 0], sizes = [1, 32], strides = [1, 1]} : vector<32x32xf32> to vector<1x32xf32>
    %253 = vector.broadcast %252 : vector<1x32xf32> to vector<16x32xf32>
    %254 = arith.addf %251, %253 : vector<16x32xf32>
    %255 = tpu.concatenate %236, %242, %248, %254 in 0 : vector<16x32xf32>, vector<16x32xf32>, vector<16x32xf32>, vector<16x32xf32> -> vector<64x32xf32>
    %c26 = arith.constant 26 : index
    %c0_103 = arith.constant 0 : index
    %c0_104 = arith.constant 0 : index
    %256 = vector.load %arg2[%c26, %c0_103, %c0_104] : memref<37x32x32xf32, #tpu.memory_space<vmem>>, vector<1x32x32xf32>
    %257 = vector.shape_cast %256 : vector<1x32x32xf32> to vector<32x32xf32>
    %cst_105 = arith.constant dense<0.000000e+00> : vector<16x32xf32>
    %258 = tpu.matmul %205, %257, %cst_105 {dimension_numbers = #tpu.dot_dimension_numbers<[1], [0], [0], [1], [0, 0, 1, 1], [], []>} : vector<16x32xf32>, vector<32x32xf32>, vector<16x32xf32> -> vector<16x32xf32>
    %259 = vector.extract_strided_slice %181 {offsets = [16, 0], sizes = [1, 32], strides = [1, 1]} : vector<32x32xf32> to vector<1x32xf32>
    %260 = vector.broadcast %259 : vector<1x32xf32> to vector<16x32xf32>
    %261 = arith.addf %258, %260 : vector<16x32xf32>
    %c27 = arith.constant 27 : index
    %c0_106 = arith.constant 0 : index
    %c0_107 = arith.constant 0 : index
    %262 = vector.load %arg2[%c27, %c0_106, %c0_107] : memref<37x32x32xf32, #tpu.memory_space<vmem>>, vector<1x32x32xf32>
    %263 = vector.shape_cast %262 : vector<1x32x32xf32> to vector<32x32xf32>
    %cst_108 = arith.constant dense<0.000000e+00> : vector<16x32xf32>
    %264 = tpu.matmul %205, %263, %cst_108 {dimension_numbers = #tpu.dot_dimension_numbers<[1], [0], [0], [1], [0, 0, 1, 1], [], []>} : vector<16x32xf32>, vector<32x32xf32>, vector<16x32xf32> -> vector<16x32xf32>
    %265 = vector.extract_strided_slice %181 {offsets = [17, 0], sizes = [1, 32], strides = [1, 1]} : vector<32x32xf32> to vector<1x32xf32>
    %266 = vector.broadcast %265 : vector<1x32xf32> to vector<16x32xf32>
    %267 = arith.addf %264, %266 : vector<16x32xf32>
    %c28 = arith.constant 28 : index
    %c0_109 = arith.constant 0 : index
    %c0_110 = arith.constant 0 : index
    %268 = vector.load %arg2[%c28, %c0_109, %c0_110] : memref<37x32x32xf32, #tpu.memory_space<vmem>>, vector<1x32x32xf32>
    %269 = vector.shape_cast %268 : vector<1x32x32xf32> to vector<32x32xf32>
    %cst_111 = arith.constant dense<0.000000e+00> : vector<16x32xf32>
    %270 = tpu.matmul %205, %269, %cst_111 {dimension_numbers = #tpu.dot_dimension_numbers<[1], [0], [0], [1], [0, 0, 1, 1], [], []>} : vector<16x32xf32>, vector<32x32xf32>, vector<16x32xf32> -> vector<16x32xf32>
    %271 = vector.extract_strided_slice %181 {offsets = [18, 0], sizes = [1, 32], strides = [1, 1]} : vector<32x32xf32> to vector<1x32xf32>
    %272 = vector.broadcast %271 : vector<1x32xf32> to vector<16x32xf32>
    %273 = arith.addf %270, %272 : vector<16x32xf32>
    %c29 = arith.constant 29 : index
    %c0_112 = arith.constant 0 : index
    %c0_113 = arith.constant 0 : index
    %274 = vector.load %arg2[%c29, %c0_112, %c0_113] : memref<37x32x32xf32, #tpu.memory_space<vmem>>, vector<1x32x32xf32>
    %275 = vector.shape_cast %274 : vector<1x32x32xf32> to vector<32x32xf32>
    %cst_114 = arith.constant dense<0.000000e+00> : vector<16x32xf32>
    %276 = tpu.matmul %205, %275, %cst_114 {dimension_numbers = #tpu.dot_dimension_numbers<[1], [0], [0], [1], [0, 0, 1, 1], [], []>} : vector<16x32xf32>, vector<32x32xf32>, vector<16x32xf32> -> vector<16x32xf32>
    %277 = vector.extract_strided_slice %181 {offsets = [19, 0], sizes = [1, 32], strides = [1, 1]} : vector<32x32xf32> to vector<1x32xf32>
    %278 = vector.broadcast %277 : vector<1x32xf32> to vector<16x32xf32>
    %279 = arith.addf %276, %278 : vector<16x32xf32>
    %280 = tpu.concatenate %261, %267, %273, %279 in 0 : vector<16x32xf32>, vector<16x32xf32>, vector<16x32xf32>, vector<16x32xf32> -> vector<64x32xf32>
    %cst_115 = arith.constant dense<0.000000e+00> : vector<64x64xf32>
    %281 = tpu.matmul %230, %255, %cst_115 {dimension_numbers = #tpu.dot_dimension_numbers<[1], [1], [0], [0], [0, 0, 1, 0], [], []>} : vector<64x32xf32>, vector<64x32xf32>, vector<64x64xf32> -> vector<64x64xf32>
    %282 = arith.addf %281, %1 : vector<64x64xf32>
    %cst_116 = arith.constant dense<0xFF800000> : vector<64xf32>
    %283 = vector.multi_reduction <maximumf>, %282, %cst_116 [1] : vector<64x64xf32> to vector<64xf32>
    %284 = vector.shape_cast %283 : vector<64xf32> to vector<64x1xf32>
    %285 = vector.broadcast %284 : vector<64x1xf32> to vector<64x64xf32>
    %286 = arith.subf %282, %285 : vector<64x64xf32>
    %287 = math.exp %286 : vector<64x64xf32>
    %cst_117 = arith.constant dense<0.000000e+00> : vector<64xf32>
    %288 = vector.multi_reduction <add>, %287, %cst_117 [1] : vector<64x64xf32> to vector<64xf32>
    %289 = vector.shape_cast %288 : vector<64xf32> to vector<64x1xf32>
    %290 = vector.broadcast %289 : vector<64x1xf32> to vector<64x64xf32>
    %291 = arith.divf %287, %290 : vector<64x64xf32>
    %cst_118 = arith.constant dense<0.000000e+00> : vector<64x32xf32>
    %292 = tpu.matmul %291, %280, %cst_118 {dimension_numbers = #tpu.dot_dimension_numbers<[1], [0], [0], [1], [0, 0, 1, 1], [], []>} : vector<64x64xf32>, vector<64x32xf32>, vector<64x32xf32> -> vector<64x32xf32>
    %293 = vector.extract_strided_slice %292 {offsets = [0, 0], sizes = [16, 32], strides = [1, 1]} : vector<64x32xf32> to vector<16x32xf32>
    %294 = vector.extract_strided_slice %292 {offsets = [16, 0], sizes = [16, 32], strides = [1, 1]} : vector<64x32xf32> to vector<16x32xf32>
    %295 = arith.addf %293, %294 : vector<16x32xf32>
    %296 = vector.extract_strided_slice %292 {offsets = [32, 0], sizes = [16, 32], strides = [1, 1]} : vector<64x32xf32> to vector<16x32xf32>
    %297 = arith.addf %295, %296 : vector<16x32xf32>
    %298 = vector.extract_strided_slice %292 {offsets = [48, 0], sizes = [16, 32], strides = [1, 1]} : vector<64x32xf32> to vector<16x32xf32>
    %299 = arith.addf %297, %298 : vector<16x32xf32>
    %c30 = arith.constant 30 : index
    %c0_119 = arith.constant 0 : index
    %c0_120 = arith.constant 0 : index
    %300 = vector.load %arg2[%c30, %c0_119, %c0_120] : memref<37x32x32xf32, #tpu.memory_space<vmem>>, vector<1x32x32xf32>
    %301 = vector.shape_cast %300 : vector<1x32x32xf32> to vector<32x32xf32>
    %cst_121 = arith.constant dense<0.000000e+00> : vector<16x32xf32>
    %302 = tpu.matmul %299, %301, %cst_121 {dimension_numbers = #tpu.dot_dimension_numbers<[1], [0], [0], [1], [0, 0, 1, 1], [], []>} : vector<16x32xf32>, vector<32x32xf32>, vector<16x32xf32> -> vector<16x32xf32>
    %303 = arith.addf %179, %302 : vector<16x32xf32>
    %304 = vector.extract_strided_slice %181 {offsets = [4, 0], sizes = [1, 32], strides = [1, 1]} : vector<32x32xf32> to vector<1x32xf32>
    %305 = vector.broadcast %304 : vector<1x32xf32> to vector<16x32xf32>
    %306 = arith.addf %303, %305 : vector<16x32xf32>
    %307 = vector.extract_strided_slice %181 {offsets = [2, 0], sizes = [1, 32], strides = [1, 1]} : vector<32x32xf32> to vector<1x32xf32>
    %308 = vector.extract_strided_slice %181 {offsets = [3, 0], sizes = [1, 32], strides = [1, 1]} : vector<32x32xf32> to vector<1x32xf32>
    %cst_122 = arith.constant dense<0.000000e+00> : vector<16xf32>
    %309 = vector.multi_reduction <add>, %306, %cst_122 [1] : vector<16x32xf32> to vector<16xf32>
    %310 = vector.shape_cast %309 : vector<16xf32> to vector<16x1xf32>
    %cst_123 = arith.constant 3.200000e+01 : f32
    %311 = vector.broadcast %cst_123 : f32 to vector<16x1xf32>
    %312 = arith.divf %310, %311 : vector<16x1xf32>
    %313 = vector.broadcast %312 : vector<16x1xf32> to vector<16x32xf32>
    %314 = arith.subf %306, %313 : vector<16x32xf32>
    %315 = arith.mulf %314, %314 : vector<16x32xf32>
    %cst_124 = arith.constant dense<0.000000e+00> : vector<16xf32>
    %316 = vector.multi_reduction <add>, %315, %cst_124 [1] : vector<16x32xf32> to vector<16xf32>
    %317 = vector.shape_cast %316 : vector<16xf32> to vector<16x1xf32>
    %cst_125 = arith.constant 3.200000e+01 : f32
    %318 = vector.broadcast %cst_125 : f32 to vector<16x1xf32>
    %319 = arith.divf %317, %318 : vector<16x1xf32>
    %320 = vector.broadcast %312 : vector<16x1xf32> to vector<16x32xf32>
    %321 = arith.subf %306, %320 : vector<16x32xf32>
    %cst_126 = arith.constant 9.99999997E-7 : f32
    %322 = vector.broadcast %cst_126 : f32 to vector<16x1xf32>
    %323 = arith.addf %319, %322 : vector<16x1xf32>
    %324 = math.rsqrt %323 : vector<16x1xf32>
    %325 = vector.broadcast %324 : vector<16x1xf32> to vector<16x32xf32>
    %326 = arith.mulf %321, %325 : vector<16x32xf32>
    %327 = vector.broadcast %307 : vector<1x32xf32> to vector<16x32xf32>
    %328 = arith.mulf %326, %327 : vector<16x32xf32>
    %329 = vector.broadcast %308 : vector<1x32xf32> to vector<16x32xf32>
    %330 = arith.addf %328, %329 : vector<16x32xf32>
    %c31 = arith.constant 31 : index
    %c0_127 = arith.constant 0 : index
    %c0_128 = arith.constant 0 : index
    %331 = vector.load %arg2[%c31, %c0_127, %c0_128] : memref<37x32x32xf32, #tpu.memory_space<vmem>>, vector<1x32x32xf32>
    %332 = vector.shape_cast %331 : vector<1x32x32xf32> to vector<32x32xf32>
    %cst_129 = arith.constant dense<0.000000e+00> : vector<16x32xf32>
    %333 = tpu.matmul %330, %332, %cst_129 {dimension_numbers = #tpu.dot_dimension_numbers<[1], [0], [0], [1], [0, 0, 1, 1], [], []>} : vector<16x32xf32>, vector<32x32xf32>, vector<16x32xf32> -> vector<16x32xf32>
    %334 = vector.extract_strided_slice %181 {offsets = [5, 0], sizes = [1, 32], strides = [1, 1]} : vector<32x32xf32> to vector<1x32xf32>
    %335 = vector.broadcast %334 : vector<1x32xf32> to vector<16x32xf32>
    %336 = arith.addf %333, %335 : vector<16x32xf32>
    %cst_130 = arith.constant 0.000000e+00 : f32
    %337 = vector.broadcast %cst_130 : f32 to vector<16x32xf32>
    %338 = arith.maximumf %336, %337 : vector<16x32xf32>
    %c32 = arith.constant 32 : index
    %c0_131 = arith.constant 0 : index
    %c0_132 = arith.constant 0 : index
    %339 = vector.load %arg2[%c32, %c0_131, %c0_132] : memref<37x32x32xf32, #tpu.memory_space<vmem>>, vector<1x32x32xf32>
    %340 = vector.shape_cast %339 : vector<1x32x32xf32> to vector<32x32xf32>
    %cst_133 = arith.constant dense<0.000000e+00> : vector<16x32xf32>
    %341 = tpu.matmul %330, %340, %cst_133 {dimension_numbers = #tpu.dot_dimension_numbers<[1], [0], [0], [1], [0, 0, 1, 1], [], []>} : vector<16x32xf32>, vector<32x32xf32>, vector<16x32xf32> -> vector<16x32xf32>
    %342 = vector.extract_strided_slice %181 {offsets = [6, 0], sizes = [1, 32], strides = [1, 1]} : vector<32x32xf32> to vector<1x32xf32>
    %343 = vector.broadcast %342 : vector<1x32xf32> to vector<16x32xf32>
    %344 = arith.addf %341, %343 : vector<16x32xf32>
    %cst_134 = arith.constant 0.000000e+00 : f32
    %345 = vector.broadcast %cst_134 : f32 to vector<16x32xf32>
    %346 = arith.maximumf %344, %345 : vector<16x32xf32>
    %c33 = arith.constant 33 : index
    %c0_135 = arith.constant 0 : index
    %c0_136 = arith.constant 0 : index
    %347 = vector.load %arg2[%c33, %c0_135, %c0_136] : memref<37x32x32xf32, #tpu.memory_space<vmem>>, vector<1x32x32xf32>
    %348 = vector.shape_cast %347 : vector<1x32x32xf32> to vector<32x32xf32>
    %cst_137 = arith.constant dense<0.000000e+00> : vector<16x32xf32>
    %349 = tpu.matmul %338, %348, %cst_137 {dimension_numbers = #tpu.dot_dimension_numbers<[1], [0], [0], [1], [0, 0, 1, 1], [], []>} : vector<16x32xf32>, vector<32x32xf32>, vector<16x32xf32> -> vector<16x32xf32>
    %350 = arith.addf %306, %349 : vector<16x32xf32>
    %c34 = arith.constant 34 : index
    %c0_138 = arith.constant 0 : index
    %c0_139 = arith.constant 0 : index
    %351 = vector.load %arg2[%c34, %c0_138, %c0_139] : memref<37x32x32xf32, #tpu.memory_space<vmem>>, vector<1x32x32xf32>
    %352 = vector.shape_cast %351 : vector<1x32x32xf32> to vector<32x32xf32>
    %cst_140 = arith.constant dense<0.000000e+00> : vector<16x32xf32>
    %353 = tpu.matmul %346, %352, %cst_140 {dimension_numbers = #tpu.dot_dimension_numbers<[1], [0], [0], [1], [0, 0, 1, 1], [], []>} : vector<16x32xf32>, vector<32x32xf32>, vector<16x32xf32> -> vector<16x32xf32>
    %354 = arith.addf %350, %353 : vector<16x32xf32>
    %355 = vector.extract_strided_slice %181 {offsets = [7, 0], sizes = [1, 32], strides = [1, 1]} : vector<32x32xf32> to vector<1x32xf32>
    %356 = vector.broadcast %355 : vector<1x32xf32> to vector<16x32xf32>
    %357 = arith.addf %354, %356 : vector<16x32xf32>
    %c36 = arith.constant 36 : index
    %c0_141 = arith.constant 0 : index
    %c0_142 = arith.constant 0 : index
    %358 = vector.load %arg2[%c36, %c0_141, %c0_142] : memref<37x32x32xf32, #tpu.memory_space<vmem>>, vector<1x32x32xf32>
    %359 = vector.shape_cast %358 : vector<1x32x32xf32> to vector<32x32xf32>
    %360 = vector.extract_strided_slice %359 {offsets = [0, 0], sizes = [1, 32], strides = [1, 1]} : vector<32x32xf32> to vector<1x32xf32>
    %361 = vector.extract_strided_slice %359 {offsets = [1, 0], sizes = [1, 32], strides = [1, 1]} : vector<32x32xf32> to vector<1x32xf32>
    %cst_143 = arith.constant dense<0.000000e+00> : vector<16xf32>
    %362 = vector.multi_reduction <add>, %357, %cst_143 [1] : vector<16x32xf32> to vector<16xf32>
    %363 = vector.shape_cast %362 : vector<16xf32> to vector<16x1xf32>
    %cst_144 = arith.constant 3.200000e+01 : f32
    %364 = vector.broadcast %cst_144 : f32 to vector<16x1xf32>
    %365 = arith.divf %363, %364 : vector<16x1xf32>
    %366 = vector.broadcast %365 : vector<16x1xf32> to vector<16x32xf32>
    %367 = arith.subf %357, %366 : vector<16x32xf32>
    %368 = arith.mulf %367, %367 : vector<16x32xf32>
    %cst_145 = arith.constant dense<0.000000e+00> : vector<16xf32>
    %369 = vector.multi_reduction <add>, %368, %cst_145 [1] : vector<16x32xf32> to vector<16xf32>
    %370 = vector.shape_cast %369 : vector<16xf32> to vector<16x1xf32>
    %cst_146 = arith.constant 3.200000e+01 : f32
    %371 = vector.broadcast %cst_146 : f32 to vector<16x1xf32>
    %372 = arith.divf %370, %371 : vector<16x1xf32>
    %373 = vector.broadcast %365 : vector<16x1xf32> to vector<16x32xf32>
    %374 = arith.subf %357, %373 : vector<16x32xf32>
    %cst_147 = arith.constant 9.99999997E-7 : f32
    %375 = vector.broadcast %cst_147 : f32 to vector<16x1xf32>
    %376 = arith.addf %372, %375 : vector<16x1xf32>
    %377 = math.rsqrt %376 : vector<16x1xf32>
    %378 = vector.broadcast %377 : vector<16x1xf32> to vector<16x32xf32>
    %379 = arith.mulf %374, %378 : vector<16x32xf32>
    %380 = vector.broadcast %360 : vector<1x32xf32> to vector<16x32xf32>
    %381 = arith.mulf %379, %380 : vector<16x32xf32>
    %382 = vector.broadcast %361 : vector<1x32xf32> to vector<16x32xf32>
    %383 = arith.addf %381, %382 : vector<16x32xf32>
    %c0_148 = arith.constant 0 : index
    %c0_149 = arith.constant 0 : index
    %384 = vector.load %arg3[%c0_148, %c0_149] : memref<16x32xf32, #tpu.memory_space<vmem>>, vector<16x32xf32>
    tpu.vector_store %arg3[%c0_148, %c0_149], %383 {strides = array<i32>} : memref<16x32xf32, #tpu.memory_space<vmem>>, vector<16x32xf32>,
    return
  }
}

</mosaic_0001>

<bundles_post_ra>
// kernel: encoder_forward.1
= control target key start
LH: loop header
LB: loop body
LE: loop exit
PB: predicated region body
PF: predicated region fallthrough
CT: control target
= control target key end

     0   :  { %vm29_vm0 = vcmask 261120   ;;  %s6397_s0 = inlined_call_operand.vmem [shape: f32[16,32], index: 0, kind: input, shape index: {}]   ;;  %s6398_s1 = inlined_call_operand.vmem [shape: f32[64,64], index: 1, kind: input, shape index: {}]   ;;  %s6399_s2 = inlined_call_operand.vmem [shape: f32[37,32,32], index: 2, kind: input, shape index: {}]   ;;  %s6400_s3 = inlined_call_operand.hbm [shape: f32[16,32], index: 3, kind: output, shape index: {}]  }
   0x1   :  { %v5459_v0 = vld [vmem:[%s6397_s0] sm:$0xff]  ;;  %v5464_v1 = vld [vmem:[%s6397_s0 + $0x8] sm:$0xff] }
   0x2   :  { %8 = vsyncpa [#allocation3], 0  ;;  %v30_v2 = vsel %vm29_vm0, %v5459_v0, 0.0  ;;  %v33_v3 = vsel %vm29_vm0, %v5464_v1, 0.0  ;;  %v69_v14 = vld [vmem:[%s6399_s2] sm:$0xff]  ;;  %v70_v15 = vld [vmem:[%s6399_s2 + $0x8] sm:$0xff]  ;;  %v57_v34 = vlaneseq }
   0x3   :  { %31 = vadd.xlane.f32.xlu0 %v30_v2  ;;  %v3944_v16 = vld [vmem:[%s6399_s2 + $0x40] sm:$0xff]  ;;  %v4942_v17 = vpack.c.bf16 %v70_v15, %v69_v14  ;;  %v3945_v18 = vld [vmem:[%s6399_s2 + $0x48] sm:$0xff]  ;;  %v71_v20 = vld [vmem:[%s6399_s2 + $0x10] sm:$0xff]  ;;  %vm1235_vm2 = vcmask 523264   ;;  %s5433_s23 = smov [#allocation2]  }
   0x4   :  { %v4958_v19 = vpack.c.bf16 %v3945_v18, %v3944_v16  ;;  %v72_v21 = vld [vmem:[%s6399_s2 + $0x18] sm:$0xff]  ;;  %v3946_v22 = vld [vmem:[%s6399_s2 + $0x50] sm:$0xff]  ;;  %v3938_v26 = vld [vmem:[%s6399_s2 + $0x20] sm:$0xff]  ;;  %v5510_v38 = vshrl.u32 %v57_v34, 7  ;;  %s3922_s24 = sshll.u32 %s5433_s23, 4  ;;  %s3923_s24 = int_to_ptr.vmem [resolvable:$true] %s3922_s24 }
   0x5   :  { %4943 = vmatprep.subr.bf16.mxu1 %v4942_v17  ;;  %v4946_v23 = vpack.c.bf16 %v72_v21, %v71_v20  ;;  %v3947_v24 = vld [vmem:[%s6399_s2 + $0x58] sm:$0xff]  ;;  %v3939_v27 = vld [vmem:[%s6399_s2 + $0x28] sm:$0xff]  ;;  %v3956_v28 = vld [vmem:[%s6399_s2 + $0x80] sm:$0xff]  ;;  %p5414_p1 = scmp.lt.s32.totalorder %s3923_s24, %s3923_s24 }
   0x6   :  { %4959 = vmatprep.subr.bf16.mxu0 %v4958_v19  ;;  %4945 = vmatpush3.bf16.msra.mxu1 %v4942_v17  ;;  %v4962_v25 = vpack.c.bf16 %v3947_v24, %v3946_v22  ;;  %v4950_v29 = vpack.c.bf16 %v3939_v27, %v3938_v26  ;;  %v3957_v30 = vld [vmem:[%s6399_s2 + $0x88] sm:$0xff]  ;;  %v5513_v40 = vsub.s32 0, %v5510_v38  ;;  %v5518_v41 = vld [vmem:[%s6399_s2 + $0x220] sm:$0xff]  ;;  %v5521_v42 = vsub.s32 1, %v5510_v38  ;;  %v3940_v51 = vld [vmem:[%s6399_s2 + $0x30] sm:$0xff] }
   0x7   :  { %34 = vadd.xlane.f32.xlu0 %v33_v3  ;;  %4961 = vmatpush3.bf16.msra.mxu0 %v4958_v19  ;;  %v4974_v31 = vpack.c.bf16 %v3957_v30, %v3956_v28  ;;  %v3941_v53 = vld [vmem:[%s6399_s2 + $0x38] sm:$0xff]  ;;  %v3958_v54 = vld [vmem:[%s6399_s2 + $0x90] sm:$0xff]  ;;  %v3950_v57 = vld [vmem:[%s6399_s2 + $0x60] sm:$0xff] }
   0x8   :  { %4947 = vmatprep.subr.bf16.mxu1 %v4946_v23  ;;  %4963 = vmatprep.subr.bf16.mxu0 %v4962_v25  ;;  %v60_v43 = vrot.slane %v5518_v41, %v5513_v40  ;;  %v66_v45 = vrot.slane %v5518_v41, %v5521_v42  ;;  %v3959_v55 = vld [vmem:[%s6399_s2 + $0x98] sm:$0xff]  ;;  %v4954_v58 = vpack.c.bf16 %v3941_v53, %v3940_v51  ;;  %v3951_v60 = vld [vmem:[%s6399_s2 + $0x68] sm:$0xff]  ;;  %v3968_v61 = vld [vmem:[%s6399_s2 + $0xc0] sm:$0xff] }
   0x9   :  { %v4978_v59 = vpack.c.bf16 %v3959_v55, %v3958_v54  ;;  %v3969_v62 = vld [vmem:[%s6399_s2 + $0xc8] sm:$0xff]  ;;  %v4966_v63 = vpack.c.bf16 %v3951_v60, %v3950_v57  ;;  %v3952_v3 = vld [vmem:[%s6399_s2 + $0x70] sm:$0xff]  ;;  %v3965_v16 = vld [vmem:[%s6399_s2 + $0xb8] sm:$0xff]  ;;  %v5703_v55 = vsub.s32 4, %v5510_v38 }
   0xa   :  { %4949 = vmatpush3.bf16.msra.mxu1 %v4946_v23  ;;  %v4990_v2 = vpack.c.bf16 %v3969_v62, %v3968_v61  ;;  %v3964_v15 = vld [vmem:[%s6399_s2 + $0xb0] sm:$0xff]  ;;  %v3983_v18 = vld [vmem:[%s6399_s2 + $0x118] sm:$0xff]  ;;  %v3974_v20 = vld [vmem:[%s6399_s2 + $0xe0] sm:$0xff] }
   0xb   :  { %4965 = vmatpush3.bf16.msra.mxu0 %v4962_v25  ;;  %4951 = vmatprep.subr.bf16.mxu1 %v4950_v29  ;;  %v3982_v17 = vld [vmem:[%s6399_s2 + $0x110] sm:$0xff]  ;;  %v4986_v19 = vpack.c.bf16 %v3965_v16, %v3964_v15  ;;  %v3975_v21 = vld [vmem:[%s6399_s2 + $0xe8] sm:$0xff]  ;;  %v3992_v23 = vld [vmem:[%s6399_s2 + $0x140] sm:$0xff] }
   0xc   :  { %4975 = vmatprep.subr.bf16.mxu0 %v4974_v31  ;;  %v5010_v22 = vpack.c.bf16 %v3983_v18, %v3982_v17  ;;  %v3993_v24 = vld [vmem:[%s6399_s2 + $0x148] sm:$0xff]  ;;  %v4998_v25 = vpack.c.bf16 %v3975_v21, %v3974_v20  ;;  %v3976_v27 = vld [vmem:[%s6399_s2 + $0xf0] sm:$0xff]  ;;  %v3977_v28 = vld [vmem:[%s6399_s2 + $0xf8] sm:$0xff]  ;;  %v5742_v21 = vsub.s32 7, %v5510_v38 }
   0xd   :  { %v5022_v26 = vpack.c.bf16 %v3993_v24, %v3992_v23  ;;  %v3995_v30 = vld [vmem:[%s6399_s2 + $0x158] sm:$0xff]  ;;  %vm5718_vm1 = vmpackc.low %vm29_vm0, %vm29_vm0 }
  0x90   :  { %v32_v4 = vpop.xlane.xlu0 %31 }
  0x91   :  { %v37_v5 = vmul.f32 0.03125, %v32_v4  ;;  %v3953_v4 = vld [vmem:[%s6399_s2 + $0x78] sm:$0xff] }
  0x93   :  { %v39_v6 = vsub.f32 %v5459_v0, %v37_v5  ;;  %v3970_v5 = vld [vmem:[%s6399_s2 + $0xd0] sm:$0xff] }
  0x94   :  { %v35_v7 = vpop.xlane.xlu0 %34 }
  0x95   :  { %v38_v8 = vmul.f32 0.03125, %v35_v7  ;;  %v41_v9 = vmul.f32 %v39_v6, %v39_v6  ;;  %v4970_v7 = vpack.c.bf16 %v3953_v4, %v3952_v3 }
  0x97   :  { %v40_v10 = vsub.f32 %v5464_v1, %v38_v8  ;;  %v43_v11 = vsel %vm29_vm0, %v41_v9, 0.0  ;;  %v3962_v9 = vld [vmem:[%s6399_s2 + $0xa0] sm:$0xff] }
  0x98   :  { %44 = vadd.xlane.f32.xlu1 %v43_v11  ;;  %v3980_v11 = vld [vmem:[%s6399_s2 + $0x100] sm:$0xff] }
  0x99   :  { %v42_v12 = vmul.f32 %v40_v10, %v40_v10 }
  0x9b   :  { %v46_v13 = vsel %vm29_vm0, %v42_v12, 0.0  ;;  %v3981_v12 = vld [vmem:[%s6399_s2 + $0x108] sm:$0xff] }
  0x9c   :  { %47 = vadd.xlane.f32.xlu1 %v46_v13  ;;  %v5006_v14 = vpack.c.bf16 %v3981_v12, %v3980_v11 }
 0x125   :  { %v45_v32 = vpop.xlane.xlu1 %44 }
 0x126   :  { %v49_v33 = vmul.f32 0.03125, %v45_v32  ;;  %v3986_v32 = vld [vmem:[%s6399_s2 + $0x120] sm:$0xff] }
 0x128   :  { %v51_v35 = vadd.f32 1e-06, %v49_v33  ;;  %v3987_v33 = vld [vmem:[%s6399_s2 + $0x128] sm:$0xff] }
 0x129   :  { %v48_v36 = vpop.xlane.xlu1 %47 }
 0x12a   :  { %5317 = vrsqrt.f32 %v51_v35  ;;  %v50_v37 = vmul.f32 0.03125, %v48_v36  ;;  %v5014_v35 = vpack.c.bf16 %v3987_v33, %v3986_v32  ;;  %v3988_v36 = vld [vmem:[%s6399_s2 + $0x130] sm:$0xff] }
 0x12c   :  { %v52_v39 = vadd.f32 1e-06, %v50_v37  ;;  %v3989_v37 = vld [vmem:[%s6399_s2 + $0x138] sm:$0xff] }
 0x12e   :  { %5319 = vrsqrt.f32 %v52_v39  ;;  %v5018_v39 = vpack.c.bf16 %v3989_v37, %v3988_v36 }
 0x134   :  { %v5318_v44 = vpop.eup %5317 }
 0x135   :  { %v55_v46 = vmul.f32 %v5318_v44, %v39_v6  ;;  %v3971_v6 = vld [vmem:[%s6399_s2 + $0xd8] sm:$0xff]  ;;  %v3999_v44 = vld [vmem:[%s6399_s2 + $0x168] sm:$0xff] }
 0x136   :  { %v4994_v8 = vpack.c.bf16 %v3971_v6, %v3970_v5 }
 0x137   :  { %v61_v47 = vmul.f32 %v60_v43, %v55_v46  ;;  %v4000_v46 = vld [vmem:[%s6399_s2 + $0x170] sm:$0xff] }
 0x138   :  { %v5320_v48 = vpop.eup %5319 }
 0x139   :  { %v5527_v49 = vadd.f32 %v66_v45, %v61_v47  ;;  %v56_v50 = vmul.f32 %v5320_v48, %v40_v10  ;;  %v3963_v10 = vld [vmem:[%s6399_s2 + $0xa8] sm:$0xff]  ;;  %v4001_v47 = vld [vmem:[%s6399_s2 + $0x178] sm:$0xff] }
 0x13a   :  { %v4982_v13 = vpack.c.bf16 %v3963_v10, %v3962_v9  ;;  %v5034_v48 = vpack.c.bf16 %v4001_v47, %v4000_v46  ;;  %v5733_v9 = vsub.s32 5, %v5510_v38 }
 0x13b   :  { %v62_v52 = vmul.f32 %v60_v43, %v56_v50  ;;  %4464 = vmatprep.mubr.msk.f32.mxu1 %vm29_vm0, %v5527_v49  ;;  %4486 = vmatprep.mubr.msk.f32.mxu0 %vm29_vm0, %v5527_v49  ;;  %v3998_v43 = vld [vmem:[%s6399_s2 + $0x160] sm:$0xff]  ;;  %v5690_v50 = vld [vmem:[%s6399_s2 + $0x228] sm:$0xff] }
 0x13c   :  { %v5694_v51 = vrot.slane %v5690_v50, %v5513_v40  ;;  %v418_v57 = vrot.slane %v5690_v50, %v5703_v55  ;;  %v502_v15 = vrot.slane %v5690_v50, %v5733_v9 }
 0x13d   :  { %v5545_v56 = vadd.f32 %v66_v45, %v62_v52  ;;  %v5030_v45 = vpack.c.bf16 %v3999_v44, %v3998_v43 }
 0x13f   :  { %4465 = vmatmul.mubr.msk.f32.vlgmr.msra.gmra.mrb[0].mxu1 %vm29_vm0, %v5545_v56  ;;  %4487 = vmatmul.mubr.msk.f32.vlgmr.msra.gmra.mrb[0].mxu0 %vm29_vm0, %v5545_v56 }
 0x140   :  { %4953 = vmatpush3.bf16.msra.mxu1 %v4950_v29  ;;  %4977 = vmatpush3.bf16.msra.mxu0 %v4974_v31  ;;  %v3994_v29 = vld [vmem:[%s6399_s2 + $0x150] sm:$0xff]  ;;  %v5002_v31 = vpack.c.bf16 %v3977_v28, %v3976_v27 }
 0x141   :  { %4475 = vmatprep.mubr.msk.f32.mxu1 %vm29_vm0, %v5527_v49  ;;  %4508 = vmatprep.mubr.msk.f32.mxu0 %vm29_vm0, %v5527_v49  ;;  %v5026_v34 = vpack.c.bf16 %v3995_v30, %v3994_v29  ;;  %v670_v29 = vrot.slane %v5690_v50, %v5742_v21 }
 0x142   :  { %4955 = vmatprep.subr.bf16.mxu1 %v4954_v58  ;;  %4979 = vmatprep.subr.bf16.mxu0 %v4978_v59 }
 0x144   :  { %4957 = vmatpush3.bf16.msra.mxu1 %v4954_v58  ;;  %4981 = vmatpush3.bf16.msra.mxu0 %v4978_v59 }
 0x145   :  { %4967 = vmatprep.subr.bf16.mxu1 %v4966_v63  ;;  %4991 = vmatprep.subr.bf16.mxu0 %v4990_v2 }
 0x147   :  { %4476 = vmatmul.mubr.msk.f32.vlgmr.msra.gmra.mrb[2].mxu1 %vm29_vm0, %v5545_v56  ;;  %4509 = vmatmul.mubr.msk.f32.vlgmr.msra.gmra.mrb[2].mxu0 %vm29_vm0, %v5545_v56 }
 0x148   :  { %4969 = vmatpush3.bf16.msra.mxu1 %v4966_v63  ;;  %4497 = vmatprep.mubr.msk.f32.mxu1 %vm29_vm0, %v5527_v49 }
 0x149   :  { %4993 = vmatpush3.bf16.msra.mxu0 %v4990_v2  ;;  %4530 = vmatprep.mubr.msk.f32.mxu0 %vm29_vm0, %v5527_v49  ;;  %v5714_v2 = vsub.s32 6, %v5510_v38 }
 0x14a   :  { %4971 = vmatprep.subr.bf16.mxu1 %v4970_v7  ;;  %4995 = vmatprep.subr.bf16.mxu0 %v4994_v8 }
 0x14b   :  { %v586_v5 = vrot.slane %v5690_v50, %v5714_v2 }
 0x14c   :  { %4973 = vmatpush3.bf16.msra.mxu1 %v4970_v7 }
 0x14d   :  { %4997 = vmatpush3.bf16.msra.mxu0 %v4994_v8  ;;  %4983 = vmatprep.subr.bf16.mxu1 %v4982_v13 }
 0x14e   :  { %5007 = vmatprep.subr.bf16.mxu0 %v5006_v14 }
 0x14f   :  { %4498 = vmatmul.mubr.msk.f32.vlgmr.msra.gmra.mrb[4].mxu1 %vm29_vm0, %v5545_v56 }
 0x150   :  { %4531 = vmatmul.mubr.msk.f32.vlgmr.msra.gmra.mrb[4].mxu0 %vm29_vm0, %v5545_v56  ;;  %4985 = vmatpush3.bf16.msra.mxu1 %v4982_v13  ;;  %v3935_v13 = vld [vmem:[%s6399_s2 + $0x230] sm:$0xff] }
 0x151   :  { %4519 = vmatprep.mubr.msk.f32.mxu1 %vm29_vm0, %v5527_v49  ;;  %5009 = vmatpush3.bf16.msra.mxu0 %v5006_v14  ;;  %v754_v16 = vrot.slane %v3935_v13, %v5513_v40 }
 0x152   :  { %4552 = vmatprep.mubr.msk.f32.mxu0 %vm29_vm0, %v5527_v49  ;;  %4987 = vmatprep.subr.bf16.mxu1 %v4986_v19 }
 0x153   :  { %5011 = vmatprep.subr.bf16.mxu0 %v5010_v22 }
 0x154   :  { %4989 = vmatpush3.bf16.msra.mxu1 %v4986_v19 }
 0x155   :  { %5013 = vmatpush3.bf16.msra.mxu0 %v5010_v22  ;;  %4999 = vmatprep.subr.bf16.mxu1 %v4998_v25 }
 0x156   :  { %5023 = vmatprep.subr.bf16.mxu0 %v5022_v26 }
 0x157   :  { %4520 = vmatmul.mubr.msk.f32.vlgmr.msra.gmra.mrb[6].mxu1 %vm29_vm0, %v5545_v56 }
 0x158   :  { %4553 = vmatmul.mubr.msk.f32.vlgmr.msra.gmra.mrb[6].mxu0 %vm29_vm0, %v5545_v56  ;;  %5001 = vmatpush3.bf16.msra.mxu1 %v4998_v25 }
 0x159   :  { %4541 = vmatprep.mubr.msk.f32.mxu1 %vm29_vm0, %v5527_v49  ;;  %5025 = vmatpush3.bf16.msra.mxu0 %v5022_v26  ;;  %v5745_v26 = vsub.s32 2, %v5510_v38 }
 0x15a   :  { %4574 = vmatprep.mubr.msk.f32.mxu0 %vm29_vm0, %v5527_v49  ;;  %5003 = vmatprep.subr.bf16.mxu1 %v5002_v31 }
 0x15b   :  { %5027 = vmatprep.subr.bf16.mxu0 %v5026_v34  ;;  %v922_v30 = vrot.slane %v3935_v13, %v5745_v26 }
 0x15c   :  { %5005 = vmatpush3.bf16.msra.mxu1 %v5002_v31 }
 0x15d   :  { %5029 = vmatpush3.bf16.msra.mxu0 %v5026_v34  ;;  %5015 = vmatprep.subr.bf16.mxu1 %v5014_v35 }
 0x15f   :  { %4542 = vmatmul.mubr.msk.f32.vlgmr.msra.gmra.mrb[8].mxu1 %vm29_vm0, %v5545_v56 }
 0x160   :  { %4575 = vmatmul.mubr.msk.f32.vlgmr.msra.gmra.mrb[8].mxu0 %vm29_vm0, %v5545_v56  ;;  %5017 = vmatpush3.bf16.msra.mxu1 %v5014_v35 }
 0x161   :  { %4563 = vmatprep.mubr.msk.f32.mxu1 %vm29_vm0, %v5527_v49  ;;  %5019 = vmatprep.subr.bf16.mxu1 %v5018_v39 }
 0x164   :  { %5021 = vmatpush3.bf16.msra.mxu1 %v5018_v39 }
 0x165   :  { %5031 = vmatprep.subr.bf16.mxu1 %v5030_v45 }
 0x167   :  { %4564 = vmatmul.mubr.msk.f32.vlgmr.msra.gmra.mrb[10].mxu1 %vm29_vm0, %v5545_v56 }
 0x168   :  { %5033 = vmatpush3.bf16.msra.mxu1 %v5030_v45  ;;  %4585 = vmatprep.mubr.msk.f32.mxu1 %vm29_vm0, %v5527_v49  ;;  %v838_v45 = vrot.slane %v3935_v13, %v5521_v42 }
 0x169   :  { %5035 = vmatprep.subr.bf16.mxu1 %v5034_v48 }
 0x16c   :  { %5037 = vmatpush3.bf16.msra.mxu1 %v5034_v48 }
 0x16f   :  { %4586 = vmatmul.mubr.msk.f32.vlgmr.msra.gmra.mrb[12].mxu1 %vm29_vm0, %v5545_v56 }
 0x212   :  { %v5696_v52 = vpop.f32.mrb[0].mxu1  ;;  %v5698_v53 = vpop.f32.mrb[0].mxu0 }
 0x213   :  { %v149_v54 = vpop.f32.mrb[1].mxu1  ;;  %v5700_v49 = vpop.f32.mrb[1].mxu0 }
 0x214   :  { %v150_v56 = vadd.f32 %v149_v54, %v5694_v51 }
 0x216   :  { %4604 = vmatprep.mubr.msk.f32.mxu0 %vm29_vm0, %v150_v56  ;;  %v5762_v56 = vsub.s32 3, %v5510_v38  ;;  %v155_v38 = vadd.f32 %v5696_v52, %v5694_v51 }
 0x21a   :  { %v5709_v58 = vpop.f32.mrb[2].mxu1  ;;  %v4510_v59 = vpop.f32.mrb[2].mxu0 }
 0x21b   :  { %v491_v60 = vadd.f32 %v4510_v59, %v418_v57  ;;  %v5711_v61 = vpop.f32.mrb[3].mxu1  ;;  %v485_v62 = vpop.f32.mrb[3].mxu0  ;;  %v1006_v59 = vrot.slane %v3935_v13, %v5762_v56 }
 0x21c   :  { %v486_v63 = vadd.f32 %v485_v62, %v418_v57  ;;  %v166_v62 = vrot.slane %v5690_v50, %v5521_v42 }
 0x21e   :  { %v5038_v4 = vpack.c.bf16 %v491_v60, %v486_v63 }
 0x220   :  { %5040 = vmatprep.subr.msk.bf16.mxu0 %vm5718_vm1, %v5038_v4 }
 0x221   :  { %5043 = vmatpush3.bf16.xpose.msk.msra.mxu0 %vm5718_vm1, %v5038_v4 }
 0x222   :  { %v5728_v6 = vpop.f32.mrb[4].mxu1 }
 0x223   :  { %v4532_v7 = vpop.f32.mrb[4].mxu0  ;;  %v5730_v8 = vpop.f32.mrb[5].mxu1 }
 0x224   :  { %v659_v10 = vadd.f32 %v4532_v7, %v586_v5  ;;  %v653_v11 = vpop.f32.mrb[5].mxu0 }
 0x225   :  { %v654_v12 = vadd.f32 %v653_v11, %v586_v5  ;;  %v234_v11 = vadd.f32 %v5711_v61, %v166_v62 }
 0x227   :  { %v5050_v14 = vpack.c.bf16 %v659_v10, %v654_v12  ;;  %v250_v10 = vrot.slane %v5690_v50, %v5745_v26  ;;  %v239_v12 = vadd.f32 %v5709_v58, %v166_v62 }
 0x229   :  { %v318_v13 = vadd.f32 %v5700_v49, %v250_v10  ;;  %v323_v51 = vadd.f32 %v5698_v53, %v250_v10  ;;  %v17_v49 = vld [vmem:[%s6398_s1] sm:$0xff] }
 0x22a   :  { %v4521_v17 = vpop.f32.mrb[6].mxu1 }
 0x22b   :  { %v575_v18 = vadd.f32 %v4521_v17, %v502_v15  ;;  %v4554_v19 = vpop.f32.mrb[6].mxu0  ;;  %v569_v20 = vpop.f32.mrb[7].mxu1  ;;  %v19_v17 = vld [vmem:[%s6398_s1 + $0x10] sm:$0xff] }
 0x22c   :  { %v827_v22 = vadd.f32 %v4554_v19, %v754_v16  ;;  %v570_v23 = vadd.f32 %v569_v20, %v502_v15  ;;  %v821_v24 = vpop.f32.mrb[7].mxu0 }
 0x22d   :  { %v822_v25 = vadd.f32 %v821_v24, %v754_v16  ;;  %v20_v16 = vld [vmem:[%s6398_s1 + $0x18] sm:$0xff]  ;;  %v22_v24 = vld [vmem:[%s6398_s1 + $0x28] sm:$0xff] }
 0x22e   :  { %v5044_v27 = vpack.c.bf16 %v575_v18, %v570_v23 }
 0x22f   :  { %v5062_v28 = vpack.c.bf16 %v827_v22, %v822_v25 }
 0x230   :  { %5046 = vmatprep.subr.msk.bf16.mxu0 %vm5718_vm1, %v5044_v27 }
 0x231   :  { %5063 = vmatprep.subr.bf16.mxu1 %v5062_v28  ;;  %5049 = vmatpush3.bf16.xpose.msk.msra.mxu0 %vm5718_vm1, %v5044_v27  ;;  %v21_v27 = vld [vmem:[%s6398_s1 + $0x20] sm:$0xff] }
 0x232   :  { %5065 = vmatpush3.bf16.msra.mxu1 %v5062_v28  ;;  %v4543_v31 = vpop.f32.mrb[8].mxu1  ;;  %5052 = vmatprep.subr.msk.bf16.mxu0 %vm5718_vm1, %v5050_v14 }
 0x233   :  { %v743_v32 = vadd.f32 %v4543_v31, %v670_v29  ;;  %v4576_v33 = vpop.f32.mrb[8].mxu0  ;;  %v737_v34 = vpop.f32.mrb[9].mxu1 }
 0x234   :  { %v995_v35 = vadd.f32 %v4576_v33, %v922_v30  ;;  %v738_v36 = vadd.f32 %v737_v34, %v670_v29  ;;  %v989_v37 = vpop.f32.mrb[9].mxu0  ;;  %v24_v33 = vld [vmem:[%s6398_s1 + $0x38] sm:$0xff] }
 0x235   :  { %v990_v39 = vadd.f32 %v989_v37, %v922_v30 }
 0x236   :  { %v5056_v43 = vpack.c.bf16 %v743_v32, %v738_v36 }
 0x237   :  { %v5070_v44 = vpack.c.bf16 %v995_v35, %v990_v39  ;;  %v23_v35 = vld [vmem:[%s6398_s1 + $0x30] sm:$0xff] }
 0x239   :  { %5055 = vmatpush3.bf16.xpose.msk.msra.mxu0 %vm5718_vm1, %v5050_v14  ;;  %v334_v14 = vrot.slane %v5690_v50, %v5762_v56  ;;  %v18_v50 = vld [vmem:[%s6398_s1 + $0x8] sm:$0xff] }
 0x23a   :  { %v4565_v46 = vpop.f32.mrb[10].mxu1  ;;  %5058 = vmatprep.subr.msk.bf16.mxu0 %vm5718_vm1, %v5056_v43 }
 0x23b   :  { %v911_v47 = vadd.f32 %v4565_v46, %v838_v45  ;;  %v905_v48 = vpop.f32.mrb[11].mxu1  ;;  %v402_v52 = vadd.f32 %v5730_v8, %v334_v14  ;;  %v407_v61 = vadd.f32 %v5728_v6, %v334_v14 }
 0x23c   :  { %v906_v54 = vadd.f32 %v905_v48, %v838_v45 }
 0x23e   :  { %v5066_v57 = vpack.c.bf16 %v911_v47, %v906_v54 }
 0x240   :  { %5067 = vmatprep.subr.bf16.mxu1 %v5066_v57 }
 0x241   :  { %5061 = vmatpush3.bf16.xpose.msk.msra.mxu0 %vm5718_vm1, %v5056_v43  ;;  %5069 = vmatpush3.bf16.msra.mxu1 %v5066_v57 }
 0x242   :  { %v4587_v60 = vpop.f32.mrb[12].mxu1  ;;  %5071 = vmatprep.subr.bf16.mxu1 %v5070_v44 }
 0x243   :  { %v1079_v63 = vadd.f32 %v4587_v60, %v1006_v59  ;;  %v1073_v4 = vpop.f32.mrb[13].mxu1 }
 0x244   :  { %v1074_v5 = vadd.f32 %v1073_v4, %v1006_v59 }
 0x245   :  { %5073 = vmatpush3.bf16.msra.mxu1 %v5070_v44 }
 0x246   :  { %v5074_v7 = vpack.c.bf16 %v1079_v63, %v1074_v5 }
 0x248   :  { %4605 = vmatmul.mubr.msk.f32.vlgmr.msra.gmra.mrb[10].mxu0 %vm29_vm0, %v155_v38  ;;  %5075 = vmatprep.subr.bf16.mxu1 %v5074_v7 }
 0x249   :  { %4607 = vmatprep.mubr.msk.f32.mxu0 %vm29_vm0, %v234_v11  ;;  %5077 = vmatpush3.bf16.msra.mxu1 %v5074_v7 }
 0x24c   :  { %4608 = vmatmul.mubr.msk.f32.gmra.mrb[12].mxu0 %vm29_vm0, %v239_v12 }
 0x24d   :  { %4610 = vmatprep.mubr.msk.f32.mxu0 %vm29_vm0, %v318_v13 }
 0x250   :  { %4611 = vmatmul.mubr.msk.f32.gmra.mrb[14].mxu0 %vm29_vm0, %v323_v51 }
 0x251   :  { %4613 = vmatprep.mubr.msk.f32.mxu0 %vm29_vm0, %v402_v52 }
 0x254   :  { %4614 = vmatmul.mubr.msk.f32.gmra.mrb[16].mxu0 %vm29_vm0, %v407_v61 }
 0x31b   :  { %v4606_v58 = vpop.f32.mrb[10].mxu0 }
 0x31c   :  { %v1202_v53 = vadd.f32 %v4606_v58, %v18_v50  ;;  %v1196_v8 = vpop.f32.mrb[11].mxu0 }
 0x31d   :  { %v1197_v15 = vadd.f32 %v1196_v8, %v17_v49 }
 0x31e   :  { %v1239_v6 = vsel %vm1235_vm2, %v1202_v53, -inf }
 0x31f   :  { %1240 = vmax.xlane.f32.xlu1 %v1239_v6  ;;  %v4609_v18 = vpop.f32.mrb[12].mxu0  ;;  %v1236_v19 = vsel %vm1235_vm2, %v1197_v15, -inf }
 0x320   :  { %v1212_v20 = vadd.f32 %v4609_v18, %v20_v16  ;;  %v1206_v22 = vpop.f32.mrb[13].mxu0  ;;  %1237 = vmax.xlane.f32.xlu0 %v1236_v19 }
 0x321   :  { %v1207_v23 = vadd.f32 %v1206_v22, %v19_v17 }
 0x322   :  { %v1245_v25 = vsel %vm1235_vm2, %v1212_v20, -inf }
 0x323   :  { %1246 = vmax.xlane.f32.xlu1 %v1245_v25  ;;  %v4612_v28 = vpop.f32.mrb[14].mxu0  ;;  %v1242_v29 = vsel %vm1235_vm2, %v1207_v23, -inf }
 0x324   :  { %v1222_v30 = vadd.f32 %v4612_v28, %v22_v24  ;;  %v1216_v31 = vpop.f32.mrb[15].mxu0  ;;  %1243 = vmax.xlane.f32.xlu0 %v1242_v29 }
 0x325   :  { %v1217_v32 = vadd.f32 %v1216_v31, %v21_v27  ;;  %v4028_v31 = vld [vmem:[%s6399_s2 + $0x180] sm:$0xff] }
 0x326   :  { %v1251_v34 = vsel %vm1235_vm2, %v1222_v30, -inf }
 0x327   :  { %1252 = vmax.xlane.f32.xlu1 %v1251_v34  ;;  %v4615_v36 = vpop.f32.mrb[16].mxu0  ;;  %v1248_v37 = vsel %vm1235_vm2, %v1217_v32, -inf }
 0x328   :  { %v1232_v39 = vadd.f32 %v4615_v36, %v24_v33  ;;  %v1226_v43 = vpop.f32.mrb[17].mxu0  ;;  %1249 = vmax.xlane.f32.xlu0 %v1248_v37 }
 0x329   :  { %v1227_v44 = vadd.f32 %v1226_v43, %v23_v35 }
 0x32a   :  { %v1257_v45 = vsel %vm1235_vm2, %v1232_v39, -inf }
 0x32b   :  { %1258 = vmax.xlane.f32.xlu1 %v1257_v45  ;;  %v1254_v46 = vsel %vm1235_vm2, %v1227_v44, -inf  ;;  %v4031_v45 = vld [vmem:[%s6399_s2 + $0x198] sm:$0xff] }
 0x32c   :  { %1255 = vmax.xlane.f32.xlu0 %v1254_v46 }
 0x3ac   :  { %v1241_v47 = vpop.xlane.xlu1 %1240 }
 0x3ad   :  { %v1261_v48 = vsub.f32 %v1202_v53, %v1241_v47  ;;  %v1238_v54 = vpop.xlane.xlu0 %1237 }
 0x3ae   :  { %v1260_v57 = vsub.f32 %v1197_v15, %v1238_v54 }
 0x3af   :  { %v1270_v59 = vmul.f32 1.442695, %v1261_v48 }
 0x3b0   :  { %v1268_v60 = vmul.f32 1.442695, %v1260_v57  ;;  %v1247_v62 = vpop.xlane.xlu1 %1246 }
 0x3b1   :  { %5321 = vpow2.f32 %v1270_v59  ;;  %v1263_v63 = vsub.f32 %v1212_v20, %v1247_v62  ;;  %v1244_v4 = vpop.xlane.xlu0 %1243 }
 0x3b2   :  { %5323 = vpow2.f32 %v1268_v60  ;;  %v1262_v5 = vsub.f32 %v1207_v23, %v1244_v4 }
 0x3b3   :  { %v1274_v38 = vmul.f32 1.442695, %v1263_v63 }
 0x3b4   :  { %v1272_v7 = vmul.f32 1.442695, %v1262_v5  ;;  %v1253_v10 = vpop.xlane.xlu1 %1252 }
 0x3b5   :  { %5325 = vpow2.f32 %v1274_v38  ;;  %v1265_v11 = vsub.f32 %v1222_v30, %v1253_v10  ;;  %v1250_v12 = vpop.xlane.xlu0 %1249 }
 0x3b6   :  { %5327 = vpow2.f32 %v1272_v7  ;;  %v1264_v13 = vsub.f32 %v1217_v32, %v1250_v12  ;;  %v4029_v32 = vld [vmem:[%s6399_s2 + $0x188] sm:$0xff] }
 0x3b7   :  { %v1278_v14 = vmul.f32 1.442695, %v1265_v11  ;;  %v5078_v33 = vpack.c.bf16 %v4029_v32, %v4028_v31  ;;  %v4035_v32 = vld [vmem:[%s6399_s2 + $0x1a8] sm:$0xff] }
 0x3b8   :  { %v1276_v51 = vmul.f32 1.442695, %v1264_v13  ;;  %v1259_v52 = vpop.xlane.xlu1 %1258 }
 0x3b9   :  { %5329 = vpow2.f32 %v1278_v14  ;;  %v1267_v61 = vsub.f32 %v1232_v39, %v1259_v52  ;;  %v1256_v50 = vpop.xlane.xlu0 %1255  ;;  %5079 = vmatprep.subr.bf16.mxu1 %v5078_v33 }
 0x3ba   :  { %5331 = vpow2.f32 %v1276_v51  ;;  %v1266_v49 = vsub.f32 %v1227_v44, %v1256_v50  ;;  %v4030_v44 = vld [vmem:[%s6399_s2 + $0x190] sm:$0xff]  ;;  %v1550_v50 = vrot.slane %v5518_v41, %v5703_v55 }
 0x3bb   :  { %v5322_v58 = vpop.eup %5321  ;;  %v1282_v53 = vmul.f32 1.442695, %v1267_v61  ;;  %v5082_v57 = vpack.c.bf16 %v4031_v45, %v4030_v44  ;;  %v4046_v44 = vld [vmem:[%s6399_s2 + $0x1e0] sm:$0xff]  ;;  %v4047_v45 = vld [vmem:[%s6399_s2 + $0x1e8] sm:$0xff] }
 0x3bc   :  { %v5324_v8 = vpop.eup %5323  ;;  %v1280_v15 = vmul.f32 1.442695, %v1266_v49  ;;  %v1287_v16 = vsel %vm1235_vm2, %v5322_v58, 0.0 }
 0x3bd   :  { %5333 = vpow2.f32 %v1282_v53  ;;  %1288 = vadd.xlane.f32.xlu1 %v1287_v16  ;;  %v1284_v6 = vsel %vm1235_vm2, %v5324_v8, 0.0 }
 0x3be   :  { %5335 = vpow2.f32 %v1280_v15  ;;  %1285 = vadd.xlane.f32.xlu0 %v1284_v6 }
 0x3bf   :  { %v5326_v17 = vpop.eup %5325 }
 0x3c0   :  { %v5328_v18 = vpop.eup %5327  ;;  %v1293_v19 = vsel %vm1235_vm2, %v5326_v17, 0.0 }
 0x3c1   :  { %1294 = vadd.xlane.f32.xlu1 %v1293_v19  ;;  %v1290_v20 = vsel %vm1235_vm2, %v5328_v18, 0.0 }
 0x3c2   :  { %1291 = vadd.xlane.f32.xlu0 %v1290_v20 }
 0x3c3   :  { %v5330_v22 = vpop.eup %5329 }
 0x3c4   :  { %v5332_v23 = vpop.eup %5331  ;;  %v1299_v24 = vsel %vm1235_vm2, %v5330_v22, 0.0 }
 0x3c5   :  { %1300 = vadd.xlane.f32.xlu1 %v1299_v24  ;;  %v1296_v25 = vsel %vm1235_vm2, %v5332_v23, 0.0 }
 0x3c6   :  { %1297 = vadd.xlane.f32.xlu0 %v1296_v25 }
 0x3c7   :  { %v5334_v27 = vpop.eup %5333 }
 0x3c8   :  { %v5336_v28 = vpop.eup %5335  ;;  %v1305_v29 = vsel %vm1235_vm2, %v5334_v27, 0.0 }
 0x3c9   :  { %1306 = vadd.xlane.f32.xlu1 %v1305_v29  ;;  %v1302_v30 = vsel %vm1235_vm2, %v5336_v28, 0.0  ;;  %v4041_v29 = vld [vmem:[%s6399_s2 + $0x1c8] sm:$0xff] }
 0x3ca   :  { %1303 = vadd.xlane.f32.xlu0 %v1302_v30  ;;  %v4034_v30 = vld [vmem:[%s6399_s2 + $0x1a0] sm:$0xff] }
 0x44a   :  { %v1289_v34 = vpop.xlane.xlu1 %1288 }
 0x44b   :  { %5337 = vrcp.f32 %v1289_v34  ;;  %v1286_v35 = vpop.xlane.xlu0 %1285  ;;  %v4037_v34 = vld [vmem:[%s6399_s2 + $0x1b8] sm:$0xff] }
 0x44c   :  { %5339 = vrcp.f32 %v1286_v35  ;;  %v5086_v35 = vpack.c.bf16 %v4035_v32, %v4034_v30  ;;  %v1948_v30 = vrot.slane %v5518_v41, %v5742_v21 }
 0x44e   :  { %v1295_v37 = vpop.xlane.xlu1 %1294 }
 0x44f   :  { %v1292_v36 = vpop.xlane.xlu0 %1291 }
 0x450   :  { %5341 = vrcp.f32 %v1292_v36 }
 0x451   :  { %5343 = vrcp.f32 %v1295_v37  ;;  %v4042_v37 = vld [vmem:[%s6399_s2 + $0x1d0] sm:$0xff] }
 0x452   :  { %v1301_v54 = vpop.xlane.xlu1 %1300 }
 0x453   :  { %v1298_v39 = vpop.xlane.xlu0 %1297 }
 0x454   :  { %5345 = vrcp.f32 %v1298_v39  ;;  %v4043_v39 = vld [vmem:[%s6399_s2 + $0x1d8] sm:$0xff] }
 0x455   :  { %v5338_v43 = vpop.eup %5337  ;;  %5347 = vrcp.f32 %v1301_v54 }
 0x456   :  { %v5340_v46 = vpop.eup %5339  ;;  %v1311_v48 = vmul.f32 %v5338_v43, %v5322_v58  ;;  %v1307_v5 = vpop.xlane.xlu1 %1306  ;;  %v5098_v43 = vpack.c.bf16 %v4043_v39, %v4042_v37 }
 0x457   :  { %v1309_v47 = vmul.f32 %v5340_v46, %v5324_v8  ;;  %v1304_v59 = vpop.xlane.xlu0 %1303  ;;  %v5102_v46 = vpack.c.bf16 %v4047_v45, %v4046_v44 }
 0x458   :  { %5349 = vrcp.f32 %v1304_v59 }
 0x459   :  { %4632 = vmatprep.mubr.msk.f32.mxu1 %vm1235_vm2, %v1309_v47  ;;  %5351 = vrcp.f32 %v1307_v5 }
 0x45a   :  { %v5342_v60 = vpop.eup %5341  ;;  %4633 = vmatmul.mubr.msk.f32.vlgmr.msra.gmra.mrb[14].mxu1 %vm1235_vm2, %v1311_v48 }
 0x45b   :  { %v1313_v62 = vmul.f32 %v5342_v60, %v5328_v18  ;;  %5081 = vmatpush3.bf16.msra.mxu1 %v5078_v33  ;;  %v5344_v63 = vpop.eup %5343  ;;  %v4036_v33 = vld [vmem:[%s6399_s2 + $0x1b0] sm:$0xff] }
 0x45c   :  { %5083 = vmatprep.subr.bf16.mxu1 %v5082_v57  ;;  %v1315_v38 = vmul.f32 %v5344_v63, %v5326_v17  ;;  %v5090_v36 = vpack.c.bf16 %v4037_v34, %v4036_v33 }
 0x45d   :  { %4635 = vmatprep.mubr.msk.f32.mxu1 %vm1235_vm2, %v1313_v62  ;;  %v1582_v62 = vrot.slane %v5518_v41, %v5745_v26 }
 0x45e   :  { %v5346_v4 = vpop.eup %5345 }
 0x45f   :  { %5085 = vmatpush3.bf16.msra.mxu1 %v5082_v57  ;;  %v1317_v7 = vmul.f32 %v5346_v4, %v5332_v23  ;;  %v5348_v10 = vpop.eup %5347 }
 0x460   :  { %v1319_v12 = vmul.f32 %v5348_v10, %v5330_v22  ;;  %5087 = vmatprep.subr.bf16.mxu1 %v5086_v35 }
 0x462   :  { %4636 = vmatmul.mubr.msk.f32.gmra.mrb[14].mxu1 %vm1235_vm2, %v1315_v38  ;;  %v5350_v11 = vpop.eup %5349 }
 0x463   :  { %4638 = vmatprep.mubr.msk.f32.mxu1 %vm1235_vm2, %v1317_v7  ;;  %v1321_v13 = vmul.f32 %v5350_v11, %v5336_v28  ;;  %v5352_v14 = vpop.eup %5351  ;;  %v4040_v28 = vld [vmem:[%s6399_s2 + $0x1c0] sm:$0xff]  ;;  %v1588_v7 = vrot.slane %v5518_v41, %v5762_v56 }
 0x464   :  { %v1323_v51 = vmul.f32 %v5352_v14, %v5334_v27  ;;  %v5094_v31 = vpack.c.bf16 %v4041_v29, %v4040_v28  ;;  %v4048_v14 = vld [vmem:[%s6399_s2 + $0x1f0] sm:$0xff] }
 0x466   :  { %5095 = vmatprep.subr.bf16.mxu0 %v5094_v31 }
 0x467   :  { %5097 = vmatpush3.bf16.msra.mxu0 %v5094_v31 }
 0x468   :  { %5099 = vmatprep.subr.bf16.mxu0 %v5098_v43 }
 0x46a   :  { %4639 = vmatmul.mubr.msk.f32.gmra.mrb[14].mxu1 %vm1235_vm2, %v1319_v12 }
 0x46b   :  { %4641 = vmatprep.mubr.msk.f32.mxu1 %vm1235_vm2, %v1321_v13  ;;  %5101 = vmatpush3.bf16.msra.mxu0 %v5098_v43 }
 0x472   :  { %4642 = vmatmul.mubr.msk.f32.gmra.mrb[14].mxu1 %vm1235_vm2, %v1323_v51  ;;  %v4049_v51 = vld [vmem:[%s6399_s2 + $0x1f8] sm:$0xff] }
 0x545   :  { %v4643_v52 = vpop.f32.mrb[14].mxu1 }
 0x546   :  { %v1444_v61 = vpop.f32.mrb[15].mxu1 }
 0x547   :  { %4652 = vmatprep.mubr.msk.f32.mxu1 %vm29_vm0, %v1444_v61  ;;  %v4052_v61 = vld [vmem:[%s6399_s2 + $0x200] sm:$0xff] }
 0x548   :  { %4653 = vmatmul.mubr.msk.f32.vlgmr.msra.gmra.mrb[16].mxu1 %vm29_vm0, %v4643_v52  ;;  %v5106_v52 = vpack.c.bf16 %v4049_v51, %v4048_v14  ;;  %v4068_v14 = vld [vmem:[%s6399_s2 + $0x268] sm:$0xff]  ;;  %v4085_v51 = vld [vmem:[%s6399_s2 + $0x2c0] sm:$0xff] }
 0x549   :  { %5089 = vmatpush3.bf16.msra.mxu1 %v5086_v35 }
 0x54a   :  { %5091 = vmatprep.subr.bf16.mxu1 %v5090_v36 }
 0x54d   :  { %5093 = vmatpush3.bf16.msra.mxu1 %v5090_v36 }
 0x54e   :  { %5103 = vmatprep.subr.bf16.mxu1 %v5102_v46 }
 0x61b   :  { %v4654_v49 = vpop.f32.mrb[16].mxu1 }
 0x61c   :  { %v1546_v58 = vadd.f32 %v4654_v49, %v5464_v1  ;;  %v1536_v53 = vpop.f32.mrb[17].mxu1 }
 0x61d   :  { %v1545_v8 = vadd.f32 %v1536_v53, %v5459_v0  ;;  %v1691_v53 = vrot.slane %v5518_v41, %v5714_v2 }
 0x61e   :  { %v5854_v15 = vadd.f32 %v1550_v50, %v1546_v58  ;;  %v1599_v58 = vrot.slane %v5518_v41, %v5733_v9 }
 0x61f   :  { %v5856_v16 = vadd.f32 %v1550_v50, %v1545_v8  ;;  %v4053_v50 = vld [vmem:[%s6399_s2 + $0x208] sm:$0xff] }
 0x620   :  { %v1556_v6 = vsel %vm29_vm0, %v5854_v15, 0.0  ;;  %v5110_v49 = vpack.c.bf16 %v4053_v50, %v4052_v61  ;;  %v4086_v61 = vld [vmem:[%s6399_s2 + $0x2c8] sm:$0xff] }
 0x621   :  { %1557 = vadd.xlane.f32.xlu1 %v1556_v6  ;;  %v1553_v17 = vsel %vm29_vm0, %v5856_v16, 0.0  ;;  %v5150_v50 = vpack.c.bf16 %v4086_v61, %v4085_v51  ;;  %v4121_v51 = vld [vmem:[%s6399_s2 + $0x380] sm:$0xff] }
 0x622   :  { %1554 = vadd.xlane.f32.xlu0 %v1553_v17 }
 0x6ae   :  { %v1558_v18 = vpop.xlane.xlu1 %1557 }
 0x6af   :  { %v1560_v19 = vmul.f32 0.03125, %v1558_v18  ;;  %v1555_v20 = vpop.xlane.xlu0 %1554 }
 0x6b0   :  { %v1559_v22 = vmul.f32 0.03125, %v1555_v20 }
 0x6b1   :  { %v1562_v1 = vsub.f32 %v5854_v15, %v1560_v19 }
 0x6b2   :  { %v1561_v0 = vsub.f32 %v5856_v16, %v1559_v22 }
 0x6b3   :  { %v1564_v23 = vmul.f32 %v1562_v1, %v1562_v1 }
 0x6b4   :  { %v1563_v24 = vmul.f32 %v1561_v0, %v1561_v0 }
 0x6b5   :  { %v1568_v25 = vsel %vm29_vm0, %v1564_v23, 0.0 }
 0x6b6   :  { %1569 = vadd.xlane.f32.xlu1 %v1568_v25  ;;  %v1565_v27 = vsel %vm29_vm0, %v1563_v24, 0.0 }
 0x6b7   :  { %1566 = vadd.xlane.f32.xlu0 %v1565_v27 }
 0x743   :  { %v1570_v47 = vpop.xlane.xlu1 %1569 }
 0x744   :  { %v1572_v48 = vmul.f32 0.03125, %v1570_v47  ;;  %v1567_v54 = vpop.xlane.xlu0 %1566 }
 0x745   :  { %v1571_v57 = vmul.f32 0.03125, %v1567_v54 }
 0x746   :  { %v1574_v59 = vadd.f32 1e-06, %v1572_v48 }
 0x747   :  { %v1573_v60 = vadd.f32 1e-06, %v1571_v57  ;;  %v4061_v57 = vld [vmem:[%s6399_s2 + $0x240] sm:$0xff] }
 0x748   :  { %5353 = vrsqrt.f32 %v1574_v59  ;;  %v4062_v59 = vld [vmem:[%s6399_s2 + $0x248] sm:$0xff] }
 0x749   :  { %5355 = vrsqrt.f32 %v1573_v60  ;;  %v4073_v60 = vld [vmem:[%s6399_s2 + $0x280] sm:$0xff] }
 0x752   :  { %v5354_v63 = vpop.eup %5353 }
 0x753   :  { %v5356_v4 = vpop.eup %5355  ;;  %v1578_v5 = vmul.f32 %v5354_v63, %v1562_v1  ;;  %v4054_v1 = vld [vmem:[%s6399_s2 + $0x210] sm:$0xff]  ;;  %v4074_v63 = vld [vmem:[%s6399_s2 + $0x288] sm:$0xff] }
 0x754   :  { %v1577_v38 = vmul.f32 %v5356_v4, %v1561_v0  ;;  %v4055_v0 = vld [vmem:[%s6399_s2 + $0x218] sm:$0xff]  ;;  %v5134_v4 = vpack.c.bf16 %v4074_v63, %v4073_v60  ;;  %v4109_v60 = vld [vmem:[%s6399_s2 + $0x340] sm:$0xff] }
 0x755   :  { %v1584_v10 = vmul.f32 %v1582_v62, %v1578_v5  ;;  %v5114_v25 = vpack.c.bf16 %v4055_v0, %v4054_v1  ;;  %v4063_v5 = vld [vmem:[%s6399_s2 + $0x250] sm:$0xff] }
 0x756   :  { %v1583_v11 = vmul.f32 %v1582_v62, %v1577_v38  ;;  %v5118_v62 = vpack.c.bf16 %v4062_v59, %v4061_v57  ;;  %v4064_v38 = vld [vmem:[%s6399_s2 + $0x258] sm:$0xff]  ;;  %v4091_v57 = vld [vmem:[%s6399_s2 + $0x2e0] sm:$0xff]  ;;  %v4092_v59 = vld [vmem:[%s6399_s2 + $0x2e8] sm:$0xff] }
 0x757   :  { %v1590_v13 = vadd.f32 %v1588_v7, %v1584_v10  ;;  %v5122_v10 = vpack.c.bf16 %v4064_v38, %v4063_v5  ;;  %v5158_v63 = vpack.c.bf16 %v4092_v59, %v4091_v57  ;;  %v4093_v5 = vld [vmem:[%s6399_s2 + $0x2f0] sm:$0xff]  ;;  %v4094_v38 = vld [vmem:[%s6399_s2 + $0x2f8] sm:$0xff] }
 0x758   :  { %v1589_v12 = vadd.f32 %v1588_v7, %v1583_v11  ;;  %5119 = vmatprep.subr.bf16.mxu0 %v5118_v62  ;;  %v4075_v7 = vld [vmem:[%s6399_s2 + $0x290] sm:$0xff]  ;;  %v4076_v11 = vld [vmem:[%s6399_s2 + $0x298] sm:$0xff] }
 0x75a   :  { %4663 = vmatprep.mubr.msk.f32.mxu1 %vm29_vm0, %v1589_v12  ;;  %4674 = vmatprep.mubr.msk.f32.mxu0 %vm29_vm0, %v1589_v12  ;;  %v5138_v12 = vpack.c.bf16 %v4076_v11, %v4075_v7  ;;  %v4111_v7 = vld [vmem:[%s6399_s2 + $0x350] sm:$0xff]  ;;  %v5162_v11 = vpack.c.bf16 %v4094_v38, %v4093_v5 }
 0x75b   :  { %4664 = vmatmul.mubr.msk.f32.vlgmr.msra.gmra.mrb[18].mxu1 %vm29_vm0, %v1590_v13  ;;  %4675 = vmatmul.mubr.msk.f32.vlgmr.msra.gmra.mrb[18].mxu0 %vm29_vm0, %v1590_v13  ;;  %v4067_v13 = vld [vmem:[%s6399_s2 + $0x260] sm:$0xff]  ;;  %v4060_v5 = vld [vmem:[%s6399_s2 + $0x470] sm:$0xff] }
 0x75c   :  { %5105 = vmatpush3.bf16.msra.mxu1 %v5102_v46  ;;  %5121 = vmatpush3.bf16.msra.mxu0 %v5118_v62  ;;  %v4110_v62 = vld [vmem:[%s6399_s2 + $0x348] sm:$0xff] }
 0x75d   :  { %5107 = vmatprep.subr.bf16.mxu1 %v5106_v52  ;;  %5123 = vmatprep.subr.bf16.mxu0 %v5122_v10 }
 0x760   :  { %5109 = vmatpush3.bf16.msra.mxu1 %v5106_v52  ;;  %5125 = vmatpush3.bf16.msra.mxu0 %v5122_v10  ;;  %v5126_v52 = vpack.c.bf16 %v4068_v14, %v4067_v13  ;;  %v4112_v10 = vld [vmem:[%s6399_s2 + $0x358] sm:$0xff]  ;;  %v4104_v13 = vld [vmem:[%s6399_s2 + $0x328] sm:$0xff] }
 0x761   :  { %5111 = vmatprep.subr.bf16.mxu1 %v5110_v49  ;;  %v5186_v14 = vpack.c.bf16 %v4112_v10, %v4111_v7  ;;  %v2679_v10 = vrot.slane %v4060_v5, %v5513_v40 }
 0x762   :  { %5127 = vmatprep.subr.bf16.mxu0 %v5126_v52 }
 0x82e   :  { %v4665_v8 = vpop.f32.mrb[18].mxu1  ;;  %v4676_v6 = vpop.f32.mrb[18].mxu0 }
 0x82f   :  { %v1678_v17 = vadd.f32 %v4665_v8, %v1599_v58  ;;  %v1672_v18 = vpop.f32.mrb[19].mxu1  ;;  %v1758_v19 = vpop.f32.mrb[19].mxu0  ;;  %v1764_v28 = vadd.f32 %v4676_v6, %v1691_v53 }
 0x830   :  { %v1673_v20 = vadd.f32 %v1672_v18, %v1599_v58  ;;  %v1759_v22 = vadd.f32 %v1758_v19, %v1691_v53  ;;  %v5985_v18 = vld [vmem:[%s6399_s2 + $0x460] sm:$0xff] }
 0x831   :  { %v1682_v24 = vmax.f32 %v1678_v17, 0.0  ;;  %v1768_v29 = vmax.f32 %v1764_v28, 0.0  ;;  %v1984_v19 = vrot.slane %v5985_v18, %v5513_v40  ;;  %v1990_v0 = vrot.slane %v5985_v18, %v5521_v42  ;;  %v4070_v28 = vld [vmem:[%s6399_s2 + $0x278] sm:$0xff] }
 0x832   :  { %v1681_v23 = vmax.f32 %v1673_v20, 0.0  ;;  %v1767_v27 = vmax.f32 %v1759_v22, 0.0 }
 0x834   :  { %4685 = vmatprep.mubr.msk.f32.mxu1 %vm29_vm0, %v1681_v23 }
 0x835   :  { %4686 = vmatmul.mubr.msk.f32.vlgmr.msra.gmra.mrb[20].mxu1 %vm29_vm0, %v1682_v24 }
 0x836   :  { %5113 = vmatpush3.bf16.msra.mxu1 %v5110_v49  ;;  %4696 = vmatprep.mubr.msk.f32.mxu1 %vm29_vm0, %v1767_v27  ;;  %v4069_v27 = vld [vmem:[%s6399_s2 + $0x270] sm:$0xff] }
 0x837   :  { %5115 = vmatprep.subr.bf16.mxu1 %v5114_v25 }
 0x83a   :  { %5117 = vmatpush3.bf16.msra.mxu1 %v5114_v25 }
 0x83b   :  { %5135 = vmatprep.subr.bf16.mxu1 %v5134_v4 }
 0x83d   :  { %4697 = vmatmul.mubr.msk.f32.vlgmr.msra.gmra.mrb[20].mxu1 %vm29_vm0, %v1768_v29  ;;  %v4087_v29 = vld [vmem:[%s6399_s2 + $0x2d0] sm:$0xff] }
 0x83e   :  { %5137 = vmatpush3.bf16.msra.mxu1 %v5134_v4  ;;  %v5182_v4 = vpack.c.bf16 %v4110_v62, %v4109_v60 }
 0x83f   :  { %5139 = vmatprep.subr.bf16.mxu1 %v5138_v12 }
 0x842   :  { %5141 = vmatpush3.bf16.msra.mxu1 %v5138_v12  ;;  %v4103_v12 = vld [vmem:[%s6399_s2 + $0x320] sm:$0xff] }
 0x843   :  { %5151 = vmatprep.subr.bf16.mxu1 %v5150_v50  ;;  %v5174_v61 = vpack.c.bf16 %v4104_v13, %v4103_v12 }
 0x910   :  { %v4698_v31 = vpop.f32.mrb[20].mxu1 }
 0x911   :  { %v5294_v32 = vadd.f32 %v4698_v31, %v5854_v15  ;;  %v1934_v33 = vpop.f32.mrb[21].mxu1 }
 0x912   :  { %v5295_v34 = vadd.f32 %v1934_v33, %v5856_v16  ;;  %v4079_v33 = vld [vmem:[%s6399_s2 + $0x2a0] sm:$0xff] }
 0x913   :  { %v5934_v35 = vadd.f32 %v5294_v32, %v1948_v30 }
 0x914   :  { %v5936_v36 = vadd.f32 %v5295_v34, %v1948_v30  ;;  %v4088_v30 = vld [vmem:[%s6399_s2 + $0x2d8] sm:$0xff]  ;;  %v5130_v34 = vpack.c.bf16 %v4070_v28, %v4069_v27  ;;  %v4129_v28 = vld [vmem:[%s6399_s2 + $0x3b0] sm:$0xff] }
 0x915   :  { %v1958_v37 = vsel %vm29_vm0, %v5934_v35, 0.0 }
 0x916   :  { %1959 = vadd.xlane.f32.xlu1 %v1958_v37  ;;  %v1955_v39 = vsel %vm29_vm0, %v5936_v36, 0.0  ;;  %v5154_v37 = vpack.c.bf16 %v4088_v30, %v4087_v29  ;;  %v4130_v29 = vld [vmem:[%s6399_s2 + $0x3b8] sm:$0xff] }
 0x917   :  { %1956 = vadd.xlane.f32.xlu0 %v1955_v39  ;;  %v4080_v39 = vld [vmem:[%s6399_s2 + $0x2a8] sm:$0xff]  ;;  %v5210_v30 = vpack.c.bf16 %v4130_v29, %v4129_v28 }
 0x9a3   :  { %v1960_v43 = vpop.xlane.xlu1 %1959 }
 0x9a4   :  { %v1962_v41 = vmul.f32 0.03125, %v1960_v43  ;;  %v1957_v44 = vpop.xlane.xlu0 %1956  ;;  %v4097_v43 = vld [vmem:[%s6399_s2 + $0x300] sm:$0xff] }
 0x9a5   :  { %v1961_v45 = vmul.f32 0.03125, %v1957_v44  ;;  %v5142_v44 = vpack.c.bf16 %v4080_v39, %v4079_v33  ;;  %v6154_v33 = vld [vmem:[%s6399_s2 + $0x468] sm:$0xff] }
 0x9a6   :  { %v1964_v15 = vsub.f32 %v5934_v35, %v1962_v41  ;;  %v4098_v41 = vld [vmem:[%s6399_s2 + $0x308] sm:$0xff]  ;;  %v2427_v7 = vrot.slane %v6154_v33, %v5733_v9 }
 0x9a7   :  { %v1963_v16 = vsub.f32 %v5936_v36, %v1961_v45  ;;  %v5166_v45 = vpack.c.bf16 %v4098_v41, %v4097_v43 }
 0x9a8   :  { %v1966_v46 = vmul.f32 %v1964_v15, %v1964_v15 }
 0x9a9   :  { %v1965_v47 = vmul.f32 %v1963_v16, %v1963_v16 }
 0x9aa   :  { %v1970_v48 = vsel %vm29_vm0, %v1966_v46, 0.0  ;;  %v4099_v46 = vld [vmem:[%s6399_s2 + $0x310] sm:$0xff] }
 0x9ab   :  { %1971 = vadd.xlane.f32.xlu1 %v1970_v48  ;;  %v1967_v54 = vsel %vm29_vm0, %v1965_v47, 0.0  ;;  %v4100_v47 = vld [vmem:[%s6399_s2 + $0x318] sm:$0xff] }
 0x9ac   :  { %1968 = vadd.xlane.f32.xlu0 %v1967_v54  ;;  %v5170_v54 = vpack.c.bf16 %v4100_v47, %v4099_v46 }
 0xa38   :  { %v1972_v49 = vpop.xlane.xlu1 %1971 }
 0xa39   :  { %v1974_v58 = vmul.f32 0.03125, %v1972_v49  ;;  %v1969_v53 = vpop.xlane.xlu0 %1968  ;;  %v4105_v49 = vld [vmem:[%s6399_s2 + $0x330] sm:$0xff] }
 0xa3a   :  { %v1973_v8 = vmul.f32 0.03125, %v1969_v53  ;;  %v4123_v53 = vld [vmem:[%s6399_s2 + $0x390] sm:$0xff] }
 0xa3b   :  { %v1976_v6 = vadd.f32 1e-06, %v1974_v58  ;;  %v4106_v58 = vld [vmem:[%s6399_s2 + $0x338] sm:$0xff] }
 0xa3c   :  { %v1975_v17 = vadd.f32 1e-06, %v1973_v8  ;;  %v4124_v8 = vld [vmem:[%s6399_s2 + $0x398] sm:$0xff] }
 0xa3d   :  { %5357 = vrsqrt.f32 %v1976_v6  ;;  %v5178_v6 = vpack.c.bf16 %v4106_v58, %v4105_v49 }
 0xa3e   :  { %5359 = vrsqrt.f32 %v1975_v17  ;;  %v4115_v17 = vld [vmem:[%s6399_s2 + $0x360] sm:$0xff] }
 0xa47   :  { %v5358_v20 = vpop.eup %5357 }
 0xa48   :  { %v5360_v22 = vpop.eup %5359  ;;  %v1980_v1 = vmul.f32 %v5358_v20, %v1964_v15  ;;  %v4081_v15 = vld [vmem:[%s6399_s2 + $0x2b0] sm:$0xff]  ;;  %v5202_v20 = vpack.c.bf16 %v4124_v8, %v4123_v53  ;;  %v2595_v53 = vrot.slane %v6154_v33, %v5742_v21  ;;  %v2847_v8 = vrot.slane %v4060_v5, %v5745_v26 }
 0xa49   :  { %v1979_v23 = vmul.f32 %v5360_v22, %v1963_v16  ;;  %v4082_v16 = vld [vmem:[%s6399_s2 + $0x2b8] sm:$0xff] }
 0xa4a   :  { %v1986_v24 = vmul.f32 %v1984_v19, %v1980_v1  ;;  %v5146_v48 = vpack.c.bf16 %v4082_v16, %v4081_v15  ;;  %v4117_v1 = vld [vmem:[%s6399_s2 + $0x370] sm:$0xff] }
 0xa4b   :  { %v1985_v25 = vmul.f32 %v1984_v19, %v1979_v23  ;;  %v4116_v19 = vld [vmem:[%s6399_s2 + $0x368] sm:$0xff] }
 0xa4c   :  { %v6005_v32 = vadd.f32 %v1990_v0, %v1986_v24  ;;  %v5190_v22 = vpack.c.bf16 %v4116_v19, %v4115_v17  ;;  %v4127_v24 = vld [vmem:[%s6399_s2 + $0x3a0] sm:$0xff] }
 0xa4d   :  { %v6003_v31 = vadd.f32 %v1990_v0, %v1985_v25  ;;  %v4118_v0 = vld [vmem:[%s6399_s2 + $0x378] sm:$0xff]  ;;  %v4128_v25 = vld [vmem:[%s6399_s2 + $0x3a8] sm:$0xff] }
 0xa4e   :  { %v5194_v23 = vpack.c.bf16 %v4118_v0, %v4117_v1  ;;  %v5206_v27 = vpack.c.bf16 %v4128_v25, %v4127_v24 }
 0xa4f   :  { %4707 = vmatprep.mubr.msk.f32.mxu0 %vm29_vm0, %v6003_v31  ;;  %4729 = vmatprep.mubr.msk.f32.mxu1 %vm29_vm0, %v6003_v31 }
 0xa50   :  { %4708 = vmatmul.mubr.msk.f32.vlgmr.msra.gmra.mrb[20].mxu0 %vm29_vm0, %v6005_v32  ;;  %4730 = vmatmul.mubr.msk.f32.vlgmr.msra.gmra.mrb[22].mxu1 %vm29_vm0, %v6005_v32 }
 0xa51   :  { %5129 = vmatpush3.bf16.msra.mxu0 %v5126_v52  ;;  %5153 = vmatpush3.bf16.msra.mxu1 %v5150_v50  ;;  %v4122_v52 = vld [vmem:[%s6399_s2 + $0x388] sm:$0xff] }
 0xa52   :  { %4718 = vmatprep.mubr.msk.f32.mxu0 %vm29_vm0, %v6003_v31  ;;  %4751 = vmatprep.mubr.msk.f32.mxu1 %vm29_vm0, %v6003_v31  ;;  %v5198_v50 = vpack.c.bf16 %v4122_v52, %v4121_v51 }
 0xa53   :  { %5131 = vmatprep.subr.bf16.mxu0 %v5130_v34  ;;  %5155 = vmatprep.subr.bf16.mxu1 %v5154_v37 }
 0xa55   :  { %5133 = vmatpush3.bf16.msra.mxu0 %v5130_v34  ;;  %5157 = vmatpush3.bf16.msra.mxu1 %v5154_v37  ;;  %v6158_v34 = vrot.slane %v6154_v33, %v5513_v40 }
 0xa56   :  { %5143 = vmatprep.subr.bf16.mxu0 %v5142_v44  ;;  %5167 = vmatprep.subr.bf16.mxu1 %v5166_v45 }
 0xa58   :  { %4719 = vmatmul.mubr.msk.f32.vlgmr.msra.gmra.mrb[22].mxu0 %vm29_vm0, %v6005_v32  ;;  %4752 = vmatmul.mubr.msk.f32.vlgmr.msra.gmra.mrb[24].mxu1 %vm29_vm0, %v6005_v32 }
 0xa59   :  { %5145 = vmatpush3.bf16.msra.mxu0 %v5142_v44  ;;  %4740 = vmatprep.mubr.msk.f32.mxu0 %vm29_vm0, %v6003_v31 }
 0xa5a   :  { %5169 = vmatpush3.bf16.msra.mxu1 %v5166_v45  ;;  %4773 = vmatprep.mubr.msk.f32.mxu1 %vm29_vm0, %v6003_v31 }
 0xa5b   :  { %5147 = vmatprep.subr.bf16.mxu0 %v5146_v48  ;;  %5171 = vmatprep.subr.bf16.mxu1 %v5170_v54 }
 0xa5d   :  { %5149 = vmatpush3.bf16.msra.mxu0 %v5146_v48 }
 0xa5e   :  { %5173 = vmatpush3.bf16.msra.mxu1 %v5170_v54  ;;  %5159 = vmatprep.subr.bf16.mxu0 %v5158_v63  ;;  %v2511_v54 = vrot.slane %v6154_v33, %v5714_v2 }
 0xa5f   :  { %5183 = vmatprep.subr.bf16.mxu1 %v5182_v4 }
 0xa60   :  { %4741 = vmatmul.mubr.msk.f32.vlgmr.msra.gmra.mrb[24].mxu0 %vm29_vm0, %v6005_v32 }
 0xa61   :  { %4774 = vmatmul.mubr.msk.f32.vlgmr.msra.gmra.mrb[26].mxu1 %vm29_vm0, %v6005_v32  ;;  %5161 = vmatpush3.bf16.msra.mxu0 %v5158_v63 }
 0xa62   :  { %4762 = vmatprep.mubr.msk.f32.mxu0 %vm29_vm0, %v6003_v31  ;;  %5185 = vmatpush3.bf16.msra.mxu1 %v5182_v4 }
 0xa63   :  { %4795 = vmatprep.mubr.msk.f32.mxu1 %vm29_vm0, %v6003_v31  ;;  %5163 = vmatprep.subr.bf16.mxu0 %v5162_v11 }
 0xa64   :  { %5187 = vmatprep.subr.bf16.mxu1 %v5186_v14 }
 0xa65   :  { %5165 = vmatpush3.bf16.msra.mxu0 %v5162_v11 }
 0xa66   :  { %5189 = vmatpush3.bf16.msra.mxu1 %v5186_v14  ;;  %5175 = vmatprep.subr.bf16.mxu0 %v5174_v61 }
 0xa67   :  { %5199 = vmatprep.subr.bf16.mxu1 %v5198_v50 }
 0xa68   :  { %4763 = vmatmul.mubr.msk.f32.vlgmr.msra.gmra.mrb[26].mxu0 %vm29_vm0, %v6005_v32 }
 0xa69   :  { %4796 = vmatmul.mubr.msk.f32.vlgmr.msra.gmra.mrb[28].mxu1 %vm29_vm0, %v6005_v32  ;;  %5177 = vmatpush3.bf16.msra.mxu0 %v5174_v61 }
 0xa6a   :  { %4784 = vmatprep.mubr.msk.f32.mxu0 %vm29_vm0, %v6003_v31  ;;  %5201 = vmatpush3.bf16.msra.mxu1 %v5198_v50 }
 0xa6b   :  { %4817 = vmatprep.mubr.msk.f32.mxu1 %vm29_vm0, %v6003_v31  ;;  %5179 = vmatprep.subr.bf16.mxu0 %v5178_v6 }
 0xa6c   :  { %5203 = vmatprep.subr.bf16.mxu1 %v5202_v20 }
 0xa6d   :  { %5181 = vmatpush3.bf16.msra.mxu0 %v5178_v6 }
 0xa6e   :  { %5205 = vmatpush3.bf16.msra.mxu1 %v5202_v20  ;;  %5191 = vmatprep.subr.bf16.mxu0 %v5190_v22 }
 0xa70   :  { %4785 = vmatmul.mubr.msk.f32.vlgmr.msra.gmra.mrb[28].mxu0 %vm29_vm0, %v6005_v32 }
 0xa71   :  { %4818 = vmatmul.mubr.msk.f32.vlgmr.msra.gmra.mrb[30].mxu1 %vm29_vm0, %v6005_v32  ;;  %5193 = vmatpush3.bf16.msra.mxu0 %v5190_v22 }
 0xa72   :  { %4806 = vmatprep.mubr.msk.f32.mxu0 %vm29_vm0, %v6003_v31  ;;  %5195 = vmatprep.subr.bf16.mxu0 %v5194_v23 }
 0xa75   :  { %5197 = vmatpush3.bf16.msra.mxu0 %v5194_v23 }
 0xa76   :  { %5207 = vmatprep.subr.bf16.mxu0 %v5206_v27 }
 0xa78   :  { %4807 = vmatmul.mubr.msk.f32.vlgmr.msra.gmra.mrb[30].mxu0 %vm29_vm0, %v6005_v32 }
 0xa79   :  { %5209 = vmatpush3.bf16.msra.mxu0 %v5206_v27  ;;  %4828 = vmatprep.mubr.msk.f32.mxu0 %vm29_vm0, %v6003_v31  ;;  %v2763_v27 = vrot.slane %v4060_v5, %v5521_v42 }
 0xa7a   :  { %5211 = vmatprep.subr.bf16.mxu0 %v5210_v30 }
 0xa7d   :  { %5213 = vmatpush3.bf16.msra.mxu0 %v5210_v30 }
 0xa80   :  { %4829 = vmatmul.mubr.msk.f32.vlgmr.msra.gmra.mrb[32].mxu0 %vm29_vm0, %v6005_v32  ;;  %v2343_v32 = vrot.slane %v6154_v33, %v5703_v55 }
 0xb23   :  { %v6160_v37 = vpop.f32.mrb[20].mxu0  ;;  %v6162_v39 = vpop.f32.mrb[22].mxu1 }
 0xb24   :  { %v2074_v43 = vpop.f32.mrb[21].mxu0  ;;  %v6164_v31 = vpop.f32.mrb[23].mxu1 }
 0xb25   :  { %v2075_v41 = vadd.f32 %v2074_v43, %v6158_v34 }
 0xb27   :  { %4847 = vmatprep.mubr.msk.f32.mxu1 %vm29_vm0, %v2075_v41 }
 0xb2b   :  { %v6170_v44 = vpop.f32.mrb[22].mxu0  ;;  %v4753_v45 = vpop.f32.mrb[24].mxu1 }
 0xb2c   :  { %v2416_v15 = vadd.f32 %v4753_v45, %v2343_v32  ;;  %v6172_v16 = vpop.f32.mrb[23].mxu0  ;;  %v2410_v46 = vpop.f32.mrb[25].mxu1 }
 0xb2d   :  { %v2411_v47 = vadd.f32 %v2410_v46, %v2343_v32  ;;  %v2931_v32 = vrot.slane %v4060_v5, %v5762_v56  ;;  %v2259_v5 = vrot.slane %v6154_v33, %v5762_v56 }
 0xb2f   :  { %v5214_v48 = vpack.c.bf16 %v2416_v15, %v2411_v47  ;;  %v2091_v15 = vrot.slane %v6154_v33, %v5521_v42 }
 0xb31   :  { %5216 = vmatprep.subr.msk.bf16.mxu1 %vm5718_vm1, %v5214_v48  ;;  %v2159_v3 = vadd.f32 %v6172_v16, %v2091_v15 }
 0xb32   :  { %5219 = vmatpush3.bf16.xpose.msk.msra.mxu1 %vm5718_vm1, %v5214_v48 }
 0xb33   :  { %v6180_v57 = vpop.f32.mrb[24].mxu0 }
 0xb34   :  { %v4775_v59 = vpop.f32.mrb[26].mxu1  ;;  %v6182_v60 = vpop.f32.mrb[25].mxu0  ;;  %v2332_v16 = vadd.f32 %v6180_v57, %v2259_v5 }
 0xb35   :  { %v2584_v62 = vadd.f32 %v4775_v59, %v2511_v54  ;;  %v2578_v63 = vpop.f32.mrb[27].mxu1 }
 0xb36   :  { %v2579_v4 = vadd.f32 %v2578_v63, %v2511_v54  ;;  %v2080_v54 = vadd.f32 %v6160_v37, %v6158_v34  ;;  %v2164_v63 = vadd.f32 %v6170_v44, %v2091_v15  ;;  %v2327_v37 = vadd.f32 %v6182_v60, %v2259_v5 }
 0xb38   :  { %v5226_v38 = vpack.c.bf16 %v2584_v62, %v2579_v4  ;;  %v2175_v62 = vrot.slane %v6154_v33, %v5745_v26  ;;  %v5401_v33 = vld [vmem:[%s6398_s1 + $0x8] sm:$0xff] }
 0xb3a   :  { %v2243_v4 = vadd.f32 %v6164_v31, %v2175_v62  ;;  %v2248_v34 = vadd.f32 %v6162_v39, %v2175_v62  ;;  %v5402_v39 = vld [vmem:[%s6398_s1] sm:$0xff] }
 0xb3b   :  { %v4764_v11 = vpop.f32.mrb[26].mxu0 }
 0xb3c   :  { %v2500_v12 = vadd.f32 %v4764_v11, %v2427_v7  ;;  %v4797_v13 = vpop.f32.mrb[28].mxu1  ;;  %v2494_v14 = vpop.f32.mrb[27].mxu0  ;;  %v5403_v11 = vld [vmem:[%s6398_s1 + $0x18] sm:$0xff] }
 0xb3d   :  { %v2752_v51 = vadd.f32 %v4797_v13, %v2679_v10  ;;  %v2495_v52 = vadd.f32 %v2494_v14, %v2427_v7  ;;  %v2746_v61 = vpop.f32.mrb[29].mxu1  ;;  %v5404_v14 = vld [vmem:[%s6398_s1 + $0x10] sm:$0xff] }
 0xb3e   :  { %v2747_v50 = vadd.f32 %v2746_v61, %v2679_v10 }
 0xb3f   :  { %v5220_v49 = vpack.c.bf16 %v2500_v12, %v2495_v52 }
 0xb40   :  { %v5238_v58 = vpack.c.bf16 %v2752_v51, %v2747_v50 }
 0xb41   :  { %5222 = vmatprep.subr.msk.bf16.mxu1 %vm5718_vm1, %v5220_v49 }
 0xb42   :  { %5239 = vmatprep.subr.bf16.mxu0 %v5238_v58  ;;  %5225 = vmatpush3.bf16.xpose.msk.msra.mxu1 %vm5718_vm1, %v5220_v49  ;;  %v5405_v49 = vld [vmem:[%s6398_s1 + $0x28] sm:$0xff] }
 0xb43   :  { %5241 = vmatpush3.bf16.msra.mxu0 %v5238_v58  ;;  %v4786_v6 = vpop.f32.mrb[28].mxu0  ;;  %5228 = vmatprep.subr.msk.bf16.mxu1 %vm5718_vm1, %v5226_v38 }
 0xb44   :  { %v2668_v17 = vadd.f32 %v4786_v6, %v2595_v53  ;;  %v4819_v19 = vpop.f32.mrb[30].mxu1  ;;  %v2662_v20 = vpop.f32.mrb[29].mxu0 }
 0xb45   :  { %v2920_v22 = vadd.f32 %v4819_v19, %v2847_v8  ;;  %v2663_v1 = vadd.f32 %v2662_v20, %v2595_v53  ;;  %v2914_v0 = vpop.f32.mrb[31].mxu1 }
 0xb46   :  { %v2915_v23 = vadd.f32 %v2914_v0, %v2847_v8  ;;  %v5406_v8 = vld [vmem:[%s6398_s1 + $0x20] sm:$0xff] }
 0xb47   :  { %v5232_v24 = vpack.c.bf16 %v2668_v17, %v2663_v1 }
 0xb48   :  { %v5246_v25 = vpack.c.bf16 %v2920_v22, %v2915_v23  ;;  %v5407_v22 = vld [vmem:[%s6398_s1 + $0x38] sm:$0xff]  ;;  %v5408_v23 = vld [vmem:[%s6398_s1 + $0x30] sm:$0xff] }
 0xb4a   :  { %5231 = vmatpush3.bf16.xpose.msk.msra.mxu1 %vm5718_vm1, %v5226_v38 }
 0xb4b   :  { %v4808_v28 = vpop.f32.mrb[30].mxu0  ;;  %5234 = vmatprep.subr.msk.bf16.mxu1 %vm5718_vm1, %v5232_v24 }
 0xb4c   :  { %v2836_v29 = vadd.f32 %v4808_v28, %v2763_v27  ;;  %v2830_v30 = vpop.f32.mrb[31].mxu0 }
 0xb4d   :  { %v2831_v43 = vadd.f32 %v2830_v30, %v2763_v27 }
 0xb4f   :  { %v5242_v41 = vpack.c.bf16 %v2836_v29, %v2831_v43 }
 0xb51   :  { %5243 = vmatprep.subr.bf16.mxu0 %v5242_v41 }
 0xb52   :  { %5237 = vmatpush3.bf16.xpose.msk.msra.mxu1 %vm5718_vm1, %v5232_v24  ;;  %5245 = vmatpush3.bf16.msra.mxu0 %v5242_v41 }
 0xb53   :  { %v4830_v45 = vpop.f32.mrb[32].mxu0  ;;  %5247 = vmatprep.subr.bf16.mxu0 %v5246_v25 }
 0xb54   :  { %v3004_v46 = vadd.f32 %v4830_v45, %v2931_v32  ;;  %v2998_v47 = vpop.f32.mrb[33].mxu0 }
 0xb55   :  { %v2999_v48 = vadd.f32 %v2998_v47, %v2931_v32 }
 0xb56   :  { %5249 = vmatpush3.bf16.msra.mxu0 %v5246_v25 }
 0xb57   :  { %v5250_v59 = vpack.c.bf16 %v3004_v46, %v2999_v48 }
 0xb59   :  { %4848 = vmatmul.mubr.msk.f32.vlgmr.msra.gmra.mrb[32].mxu1 %vm29_vm0, %v2080_v54  ;;  %5251 = vmatprep.subr.bf16.mxu0 %v5250_v59 }
 0xb5a   :  { %4850 = vmatprep.mubr.msk.f32.mxu1 %vm29_vm0, %v2159_v3  ;;  %5253 = vmatpush3.bf16.msra.mxu0 %v5250_v59 }
 0xb5d   :  { %4851 = vmatmul.mubr.msk.f32.gmra.mrb[34].mxu1 %vm29_vm0, %v2164_v63 }
 0xb5e   :  { %4853 = vmatprep.mubr.msk.f32.mxu1 %vm29_vm0, %v2243_v4 }
 0xb61   :  { %4854 = vmatmul.mubr.msk.f32.gmra.mrb[36].mxu1 %vm29_vm0, %v2248_v34 }
 0xb62   :  { %4856 = vmatprep.mubr.msk.f32.mxu1 %vm29_vm0, %v2327_v37 }
 0xb65   :  { %4857 = vmatmul.mubr.msk.f32.gmra.mrb[38].mxu1 %vm29_vm0, %v2332_v16 }
 0xc2c   :  { %v4849_v31 = vpop.f32.mrb[32].mxu1 }
 0xc2d   :  { %v3127_v44 = vadd.f32 %v5401_v33, %v4849_v31  ;;  %v3121_v38 = vpop.f32.mrb[33].mxu1 }
 0xc2e   :  { %v3122_v60 = vadd.f32 %v5402_v39, %v3121_v38 }
 0xc2f   :  { %v3163_v7 = vsel %vm1235_vm2, %v3127_v44, -inf }
 0xc30   :  { %3164 = vmax.xlane.f32.xlu1 %v3163_v7  ;;  %v4852_v10 = vpop.f32.mrb[34].mxu1  ;;  %v3160_v57 = vsel %vm1235_vm2, %v3122_v60, -inf }
 0xc31   :  { %v3137_v12 = vadd.f32 %v5403_v11, %v4852_v10  ;;  %v3131_v13 = vpop.f32.mrb[35].mxu1  ;;  %3161 = vmax.xlane.f32.xlu0 %v3160_v57 }
 0xc32   :  { %v3132_v51 = vadd.f32 %v5404_v14, %v3131_v13 }
 0xc33   :  { %v3169_v52 = vsel %vm1235_vm2, %v3137_v12, -inf }
 0xc34   :  { %3170 = vmax.xlane.f32.xlu1 %v3169_v52  ;;  %v4855_v61 = vpop.f32.mrb[36].mxu1  ;;  %v3166_v50 = vsel %vm1235_vm2, %v3132_v51, -inf }
 0xc35   :  { %v3147_v58 = vadd.f32 %v5405_v49, %v4855_v61  ;;  %v3141_v53 = vpop.f32.mrb[37].mxu1  ;;  %3167 = vmax.xlane.f32.xlu0 %v3166_v50 }
 0xc36   :  { %v3142_v6 = vadd.f32 %v5406_v8, %v3141_v53  ;;  %v4157_v53 = vld [vmem:[%s6399_s2 + $0x3c0] sm:$0xff]  ;;  %v4158_v8 = vld [vmem:[%s6399_s2 + $0x3c8] sm:$0xff] }
 0xc37   :  { %v3175_v17 = vsel %vm1235_vm2, %v3147_v58, -inf }
 0xc38   :  { %3176 = vmax.xlane.f32.xlu1 %v3175_v17  ;;  %v4858_v19 = vpop.f32.mrb[38].mxu1  ;;  %v3172_v20 = vsel %vm1235_vm2, %v3142_v6, -inf }
 0xc39   :  { %v3157_v1 = vadd.f32 %v5407_v22, %v4858_v19  ;;  %v3151_v0 = vpop.f32.mrb[39].mxu1  ;;  %3173 = vmax.xlane.f32.xlu0 %v3172_v20 }
 0xc3a   :  { %v3152_v24 = vadd.f32 %v5408_v23, %v3151_v0  ;;  %v4159_v23 = vld [vmem:[%s6399_s2 + $0x3d0] sm:$0xff] }
 0xc3b   :  { %v3181_v25 = vsel %vm1235_vm2, %v3157_v1, -inf }
 0xc3c   :  { %3182 = vmax.xlane.f32.xlu1 %v3181_v25  ;;  %v3178_v27 = vsel %vm1235_vm2, %v3152_v24, -inf }
 0xc3d   :  { %3179 = vmax.xlane.f32.xlu0 %v3178_v27 }
 0xcbd   :  { %v3165_v28 = vpop.xlane.xlu1 %3164 }
 0xcbe   :  { %v3185_v29 = vsub.f32 %v3127_v44, %v3165_v28  ;;  %v3162_v30 = vpop.xlane.xlu0 %3161 }
 0xcbf   :  { %v3184_v43 = vsub.f32 %v3122_v60, %v3162_v30 }
 0xcc0   :  { %v3194_v41 = vmul.f32 1.442695, %v3185_v29 }
 0xcc1   :  { %v3192_v32 = vmul.f32 1.442695, %v3184_v43  ;;  %v3171_v45 = vpop.xlane.xlu1 %3170 }
 0xcc2   :  { %5361 = vpow2.f32 %v3194_v41  ;;  %v3187_v15 = vsub.f32 %v3137_v12, %v3171_v45  ;;  %v3168_v46 = vpop.xlane.xlu0 %3167 }
 0xcc3   :  { %5363 = vpow2.f32 %v3192_v32  ;;  %v3186_v47 = vsub.f32 %v3132_v51, %v3168_v46 }
 0xcc4   :  { %v3198_v48 = vmul.f32 1.442695, %v3187_v15 }
 0xcc5   :  { %v3196_v54 = vmul.f32 1.442695, %v3186_v47  ;;  %v3177_v59 = vpop.xlane.xlu1 %3176 }
 0xcc6   :  { %5365 = vpow2.f32 %v3198_v48  ;;  %v3189_v62 = vsub.f32 %v3147_v58, %v3177_v59  ;;  %v3174_v3 = vpop.xlane.xlu0 %3173 }
 0xcc7   :  { %5367 = vpow2.f32 %v3196_v54  ;;  %v3188_v63 = vsub.f32 %v3142_v6, %v3174_v3  ;;  %v5254_v6 = vpack.c.bf16 %v4158_v8, %v4157_v53  ;;  %v4165_v53 = vld [vmem:[%s6399_s2 + $0x3f0] sm:$0xff]  ;;  %v4166_v8 = vld [vmem:[%s6399_s2 + $0x3f8] sm:$0xff] }
 0xcc8   :  { %v3202_v4 = vmul.f32 1.442695, %v3189_v62 }
 0xcc9   :  { %v3200_v5 = vmul.f32 1.442695, %v3188_v63  ;;  %v3183_v34 = vpop.xlane.xlu1 %3182  ;;  %5255 = vmatprep.subr.bf16.mxu0 %v5254_v6 }
 0xcca   :  { %5369 = vpow2.f32 %v3202_v4  ;;  %v3191_v37 = vsub.f32 %v3157_v1, %v3183_v34  ;;  %v3180_v16 = vpop.xlane.xlu0 %3179 }
 0xccb   :  { %5371 = vpow2.f32 %v3200_v5  ;;  %v3190_v31 = vsub.f32 %v3152_v24, %v3180_v16  ;;  %v4160_v24 = vld [vmem:[%s6399_s2 + $0x3d8] sm:$0xff] }
 0xccc   :  { %v5362_v33 = vpop.eup %5361  ;;  %v3206_v44 = vmul.f32 1.442695, %v3191_v37  ;;  %v5258_v30 = vpack.c.bf16 %v4160_v24, %v4159_v23  ;;  %v3474_v37 = vrot.slane %v5985_v18, %v5703_v55 }
 0xccd   :  { %v5364_v38 = vpop.eup %5363  ;;  %v3204_v39 = vmul.f32 1.442695, %v3190_v31  ;;  %v3211_v60 = vsel %vm1235_vm2, %v5362_v33, 0.0 }
 0xcce   :  { %5373 = vpow2.f32 %v3206_v44  ;;  %3212 = vadd.xlane.f32.xlu1 %v3211_v60  ;;  %v3208_v7 = vsel %vm1235_vm2, %v5364_v38, 0.0 }
 0xccf   :  { %5375 = vpow2.f32 %v3204_v39  ;;  %3209 = vadd.xlane.f32.xlu0 %v3208_v7 }
 0xcd0   :  { %v5366_v10 = vpop.eup %5365 }
 0xcd1   :  { %v5368_v57 = vpop.eup %5367  ;;  %v3217_v11 = vsel %vm1235_vm2, %v5366_v10, 0.0 }
 0xcd2   :  { %3218 = vadd.xlane.f32.xlu1 %v3217_v11  ;;  %v3214_v12 = vsel %vm1235_vm2, %v5368_v57, 0.0 }
 0xcd3   :  { %3215 = vadd.xlane.f32.xlu0 %v3214_v12 }
 0xcd4   :  { %v5370_v13 = vpop.eup %5369 }
 0xcd5   :  { %v5372_v14 = vpop.eup %5371  ;;  %v3223_v51 = vsel %vm1235_vm2, %v5370_v13, 0.0 }
 0xcd6   :  { %3224 = vadd.xlane.f32.xlu1 %v3223_v51  ;;  %v3220_v52 = vsel %vm1235_vm2, %v5372_v14, 0.0 }
 0xcd7   :  { %3221 = vadd.xlane.f32.xlu0 %v3220_v52  ;;  %v4169_v52 = vld [vmem:[%s6399_s2 + $0x400] sm:$0xff] }
 0xcd8   :  { %v5374_v61 = vpop.eup %5373 }
 0xcd9   :  { %v5376_v50 = vpop.eup %5375  ;;  %v3229_v49 = vsel %vm1235_vm2, %v5374_v61, 0.0 }
 0xcda   :  { %3230 = vadd.xlane.f32.xlu1 %v3229_v49  ;;  %v3226_v58 = vsel %vm1235_vm2, %v5376_v50, 0.0 }
 0xcdb   :  { %3227 = vadd.xlane.f32.xlu0 %v3226_v58  ;;  %v4164_v58 = vld [vmem:[%s6399_s2 + $0x3e8] sm:$0xff] }
 0xd5b   :  { %v3213_v17 = vpop.xlane.xlu1 %3212 }
 0xd5c   :  { %5377 = vrcp.f32 %v3213_v17  ;;  %v3210_v19 = vpop.xlane.xlu0 %3209  ;;  %v5266_v17 = vpack.c.bf16 %v4166_v8, %v4165_v53 }
 0xd5d   :  { %5379 = vrcp.f32 %v3210_v19  ;;  %v4171_v19 = vld [vmem:[%s6399_s2 + $0x410] sm:$0xff] }
 0xd5f   :  { %v3219_v22 = vpop.xlane.xlu1 %3218 }
 0xd60   :  { %v3216_v20 = vpop.xlane.xlu0 %3215 }
 0xd61   :  { %5381 = vrcp.f32 %v3216_v20  ;;  %v4172_v20 = vld [vmem:[%s6399_s2 + $0x418] sm:$0xff] }
 0xd62   :  { %5383 = vrcp.f32 %v3219_v22  ;;  %v5274_v22 = vpack.c.bf16 %v4172_v20, %v4171_v19 }
 0xd63   :  { %v3225_v29 = vpop.xlane.xlu1 %3224 }
 0xd64   :  { %v3222_v1 = vpop.xlane.xlu0 %3221 }
 0xd65   :  { %5385 = vrcp.f32 %v3222_v1  ;;  %v4175_v1 = vld [vmem:[%s6399_s2 + $0x420] sm:$0xff] }
 0xd66   :  { %v5378_v0 = vpop.eup %5377  ;;  %5387 = vrcp.f32 %v3225_v29 }
 0xd67   :  { %v5380_v25 = vpop.eup %5379  ;;  %v3235_v28 = vmul.f32 %v5378_v0, %v5362_v33  ;;  %v3231_v46 = vpop.xlane.xlu1 %3230  ;;  %v4176_v0 = vld [vmem:[%s6399_s2 + $0x428] sm:$0xff] }
 0xd68   :  { %v3233_v27 = vmul.f32 %v5380_v25, %v5364_v38  ;;  %v3228_v43 = vpop.xlane.xlu0 %3227  ;;  %v5278_v23 = vpack.c.bf16 %v4176_v0, %v4175_v1 }
 0xd69   :  { %5389 = vrcp.f32 %v3228_v43  ;;  %v3506_v43 = vrot.slane %v5985_v18, %v5745_v26  ;;  %v4177_v26 = vld [vmem:[%s6399_s2 + $0x430] sm:$0xff] }
 0xd6a   :  { %4875 = vmatprep.mubr.msk.f32.mxu0 %vm1235_vm2, %v3233_v27  ;;  %5391 = vrcp.f32 %v3231_v46  ;;  %v3512_v46 = vrot.slane %v5985_v18, %v5762_v56  ;;  %v4178_v56 = vld [vmem:[%s6399_s2 + $0x438] sm:$0xff] }
 0xd6b   :  { %v5382_v41 = vpop.eup %5381  ;;  %4876 = vmatmul.mubr.msk.f32.vlgmr.msra.gmra.mrb[34].mxu0 %vm1235_vm2, %v3235_v28 }
 0xd6c   :  { %v3237_v32 = vmul.f32 %v5382_v41, %v5368_v57  ;;  %5257 = vmatpush3.bf16.msra.mxu0 %v5254_v6  ;;  %v5384_v45 = vpop.eup %5383 }
 0xd6d   :  { %5259 = vmatprep.subr.bf16.mxu0 %v5258_v30  ;;  %v3239_v47 = vmul.f32 %v5384_v45, %v5366_v10 }
 0xd6e   :  { %4878 = vmatprep.mubr.msk.f32.mxu0 %vm1235_vm2, %v3237_v32 }
 0xd6f   :  { %v5386_v15 = vpop.eup %5385 }
 0xd70   :  { %5261 = vmatpush3.bf16.msra.mxu0 %v5258_v30  ;;  %v3241_v48 = vmul.f32 %v5386_v15, %v5372_v14  ;;  %v5388_v54 = vpop.eup %5387 }
 0xd71   :  { %v3243_v62 = vmul.f32 %v5388_v54, %v5370_v13 }
 0xd73   :  { %4879 = vmatmul.mubr.msk.f32.gmra.mrb[34].mxu0 %vm1235_vm2, %v3239_v47  ;;  %v5390_v59 = vpop.eup %5389 }
 0xd74   :  { %4881 = vmatprep.mubr.msk.f32.mxu0 %vm1235_vm2, %v3241_v48  ;;  %v3245_v3 = vmul.f32 %v5390_v59, %v5376_v50  ;;  %v5392_v63 = vpop.eup %5391  ;;  %v4163_v50 = vld [vmem:[%s6399_s2 + $0x3e0] sm:$0xff] }
 0xd75   :  { %v3247_v4 = vmul.f32 %v5392_v63, %v5374_v61  ;;  %v4170_v61 = vld [vmem:[%s6399_s2 + $0x408] sm:$0xff]  ;;  %v5262_v6 = vpack.c.bf16 %v4164_v58, %v4163_v50 }
 0xd76   :  { %v5270_v49 = vpack.c.bf16 %v4170_v61, %v4169_v52  ;;  %v4182_v63 = vld [vmem:[%s6399_s2 + $0x448] sm:$0xff] }
 0xd77   :  { %5263 = vmatprep.subr.bf16.mxu0 %v5262_v6 }
 0xd78   :  { %5271 = vmatprep.subr.bf16.mxu1 %v5270_v49 }
 0xd79   :  { %5273 = vmatpush3.bf16.msra.mxu1 %v5270_v49 }
 0xd7a   :  { %5275 = vmatprep.subr.bf16.mxu1 %v5274_v22 }
 0xd7b   :  { %4882 = vmatmul.mubr.msk.f32.gmra.mrb[34].mxu0 %vm1235_vm2, %v3243_v62  ;;  %v5282_v62 = vpack.c.bf16 %v4178_v56, %v4177_v26 }
 0xd7c   :  { %4884 = vmatprep.mubr.msk.f32.mxu0 %vm1235_vm2, %v3245_v3  ;;  %v4181_v3 = vld [vmem:[%s6399_s2 + $0x440] sm:$0xff] }
 0xd7d   :  { %5277 = vmatpush3.bf16.msra.mxu1 %v5274_v22 }
 0xd83   :  { %4885 = vmatmul.mubr.msk.f32.gmra.mrb[34].mxu0 %vm1235_vm2, %v3247_v4  ;;  %v5286_v4 = vpack.c.bf16 %v4182_v63, %v4181_v3 }
 0xe56   :  { %v4886_v5 = vpop.f32.mrb[34].mxu0 }
 0xe57   :  { %v3368_v34 = vpop.f32.mrb[35].mxu0 }
 0xe58   :  { %4895 = vmatprep.mubr.msk.f32.mxu0 %vm29_vm0, %v3368_v34  ;;  %v3615_v34 = vrot.slane %v5985_v18, %v5714_v2 }
 0xe59   :  { %4896 = vmatmul.mubr.msk.f32.vlgmr.msra.gmra.mrb[36].mxu0 %vm29_vm0, %v4886_v5  ;;  %v3523_v5 = vrot.slane %v5985_v18, %v5733_v9 }
 0xe5a   :  { %5265 = vmatpush3.bf16.msra.mxu0 %v5262_v6 }
 0xe5b   :  { %5267 = vmatprep.subr.bf16.mxu0 %v5266_v17 }
 0xe5e   :  { %5269 = vmatpush3.bf16.msra.mxu0 %v5266_v17 }
 0xe5f   :  { %5279 = vmatprep.subr.bf16.mxu0 %v5278_v23 }
 0xf2c   :  { %v4897_v16 = vpop.f32.mrb[36].mxu0 }
 0xf2d   :  { %v3470_v31 = vadd.f32 %v4897_v16, %v5934_v35  ;;  %v3460_v33 = vpop.f32.mrb[37].mxu0 }
 0xf2e   :  { %v3469_v44 = vadd.f32 %v3460_v33, %v5936_v36 }
 0xf2f   :  { %v6294_v38 = vadd.f32 %v3474_v37, %v3470_v31 }
 0xf30   :  { %v6296_v39 = vadd.f32 %v3474_v37, %v3469_v44 }
 0xf31   :  { %v3480_v60 = vsel %vm29_vm0, %v6294_v38, 0.0 }
 0xf32   :  { %3481 = vadd.xlane.f32.xlu1 %v3480_v60  ;;  %v3477_v7 = vsel %vm29_vm0, %v6296_v39, 0.0 }
 0xf33   :  { %3478 = vadd.xlane.f32.xlu0 %v3477_v7 }
 0xfbf   :  { %v3482_v10 = vpop.xlane.xlu1 %3481 }
 0xfc0   :  { %v3484_v55 = vmul.f32 0.03125, %v3482_v10  ;;  %v3479_v57 = vpop.xlane.xlu0 %3478  ;;  %v4183_v10 = vld [vmem:[%s6399_s2 + $0x450] sm:$0xff] }
 0xfc1   :  { %v3483_v11 = vmul.f32 0.03125, %v3479_v57 }
 0xfc2   :  { %v3486_v35 = vsub.f32 %v6294_v38, %v3484_v55  ;;  %v4184_v55 = vld [vmem:[%s6399_s2 + $0x458] sm:$0xff] }
 0xfc3   :  { %v3485_v36 = vsub.f32 %v6296_v39, %v3483_v11  ;;  %v5290_v11 = vpack.c.bf16 %v4184_v55, %v4183_v10 }
 0xfc4   :  { %v3488_v12 = vmul.f32 %v3486_v35, %v3486_v35 }
 0xfc5   :  { %v3487_v13 = vmul.f32 %v3485_v36, %v3485_v36 }
 0xfc6   :  { %v3492_v14 = vsel %vm29_vm0, %v3488_v12, 0.0  ;;  %v3872_v12 = vrot.slane %v5985_v18, %v5742_v21 }
 0xfc7   :  { %3493 = vadd.xlane.f32.xlu1 %v3492_v14  ;;  %v3489_v51 = vsel %vm29_vm0, %v3487_v13, 0.0 }
 0xfc8   :  { %3490 = vadd.xlane.f32.xlu0 %v3489_v51 }
0x1054   :  { %v3494_v24 = vpop.xlane.xlu1 %3493 }
0x1055   :  { %v3496_v25 = vmul.f32 0.03125, %v3494_v24  ;;  %v3491_v27 = vpop.xlane.xlu0 %3490 }
0x1056   :  { %v3495_v28 = vmul.f32 0.03125, %v3491_v27  ;;  %v4187_v27 = vld [vmem:[%s6399_s2 + $0x480] sm:$0xff]  ;;  %s5409_s2 = scalar_lea.vmem %s3923_s24, 256 }
0x1057   :  { %v3498_v29 = vadd.f32 1e-06, %v3496_v25  ;;  %p5410_p0 = scmp.ne.s32.totalorder %s3923_s24, %s5409_s2  ;;  %p5415_p2 = scmp.lt.s32.totalorder %s5409_s2, %s5409_s2 }
0x1058   :  { %v3497_v30 = vadd.f32 1e-06, %v3495_v28  ;;  %v3906_v28 = vrot.slane %v4187_v27, %v5513_v40 }
0x1059   :  { %5393 = vrsqrt.f32 %v3498_v29  ;;  %p5416_p3 = por %p5415_p2, %p5414_p1 }
0x105a   :  { %5395 = vrsqrt.f32 %v3497_v30 }
0x105b   :  { %p5417_p4 = pnand %p5416_p3, %p5410_p0 }
0x1063   :  { %v5394_v41 = vpop.eup %5393 }
0x1064   :  { %v5396_v32 = vpop.eup %5395  ;;  %v3502_v45 = vmul.f32 %v5394_v41, %v3486_v35  ;;  %v3912_v41 = vrot.slane %v4187_v27, %v5521_v42 }
0x1065   :  { %v3501_v15 = vmul.f32 %v5396_v32, %v3485_v36 }
0x1066   :  { %v3508_v47 = vmul.f32 %v3506_v43, %v3502_v45 }
0x1067   :  { %v3507_v48 = vmul.f32 %v3506_v43, %v3501_v15 }
0x1068   :  { %v3514_v59 = vadd.f32 %v3512_v46, %v3508_v47 }
0x1069   :  { %v3513_v54 = vadd.f32 %v3512_v46, %v3507_v48 }
0x106b   :  { %4906 = vmatprep.mubr.msk.f32.mxu0 %vm29_vm0, %v3513_v54  ;;  %4917 = vmatprep.mubr.msk.f32.mxu1 %vm29_vm0, %v3513_v54 }
0x106c   :  { %4907 = vmatmul.mubr.msk.f32.vlgmr.msra.gmra.mrb[38].mxu0 %vm29_vm0, %v3514_v59  ;;  %4918 = vmatmul.mubr.msk.f32.vlgmr.msra.gmra.mrb[40].mxu1 %vm29_vm0, %v3514_v59 }
0x106d   :  { %5281 = vmatpush3.bf16.msra.mxu0 %v5278_v23 }
0x106e   :  { %5283 = vmatprep.subr.bf16.mxu0 %v5282_v62 }
0x1071   :  { %5285 = vmatpush3.bf16.msra.mxu0 %v5282_v62 }
0x1072   :  { %5287 = vmatprep.subr.bf16.mxu0 %v5286_v4 }
0x113f   :  { %v4908_v37 = vpop.f32.mrb[38].mxu0  ;;  %v4919_v16 = vpop.f32.mrb[40].mxu1 }
0x1140   :  { %v3602_v31 = vadd.f32 %v4908_v37, %v3523_v5  ;;  %v3596_v33 = vpop.f32.mrb[39].mxu0  ;;  %v3682_v44 = vpop.f32.mrb[41].mxu1  ;;  %v3688_v2 = vadd.f32 %v4919_v16, %v3615_v34 }
0x1141   :  { %v3597_v60 = vadd.f32 %v3596_v33, %v3523_v5  ;;  %v3683_v7 = vadd.f32 %v3682_v44, %v3615_v34 }
0x1142   :  { %v3606_v9 = vmax.f32 %v3602_v31, 0.0  ;;  %v3692_v36 = vmax.f32 %v3688_v2, 0.0 }
0x1143   :  { %v3605_v57 = vmax.f32 %v3597_v60, 0.0  ;;  %v3691_v35 = vmax.f32 %v3683_v7, 0.0 }
0x1145   :  { %4928 = vmatprep.mubr.msk.f32.mxu0 %vm29_vm0, %v3605_v57 }
0x1146   :  { %4929 = vmatmul.mubr.msk.f32.vlgmr.msra.gmra.mrb[40].mxu0 %vm29_vm0, %v3606_v9 }
0x1147   :  { %5289 = vmatpush3.bf16.msra.mxu0 %v5286_v4  ;;  %4939 = vmatprep.mubr.msk.f32.mxu0 %vm29_vm0, %v3691_v35 }
0x1148   :  { %5291 = vmatprep.subr.bf16.mxu0 %v5290_v11 }
0x114b   :  { %5293 = vmatpush3.bf16.msra.mxu0 %v5290_v11 }
0x114e   :  { %4940 = vmatmul.mubr.msk.f32.vlgmr.msra.gmra.mrb[40].mxu0 %vm29_vm0, %v3692_v36 }
0x1221   :  { %v4941_v13 = vpop.f32.mrb[40].mxu0 }
0x1222   :  { %v5296_v14 = vadd.f32 %v4941_v13, %v6294_v38  ;;  %v3858_v51 = vpop.f32.mrb[41].mxu0 }
0x1223   :  { %v5297_v52 = vadd.f32 %v3858_v51, %v6296_v39 }
0x1224   :  { %v3874_v61 = vadd.f32 %v5296_v14, %v3872_v12 }
0x1225   :  { %v3873_v50 = vadd.f32 %v5297_v52, %v3872_v12 }
0x1226   :  { %v3880_v49 = vsel %vm29_vm0, %v3874_v61, 0.0 }
0x1227   :  { %3881 = vadd.xlane.f32.xlu1 %v3880_v49  ;;  %v3877_v58 = vsel %vm29_vm0, %v3873_v50, 0.0 }
0x1228   :  { %3878 = vadd.xlane.f32.xlu0 %v3877_v58 }
0x12b4   :  { %v3882_v53 = vpop.xlane.xlu1 %3881 }
0x12b5   :  { %v3884_v8 = vmul.f32 0.03125, %v3882_v53  ;;  %v3879_v6 = vpop.xlane.xlu0 %3878 }
0x12b6   :  { %v3883_v17 = vmul.f32 0.03125, %v3879_v6 }
0x12b7   :  { %v3886_v19 = vsub.f32 %v3874_v61, %v3884_v8 }
0x12b8   :  { %v3885_v21 = vsub.f32 %v3873_v50, %v3883_v17 }
0x12b9   :  { %v3888_v18 = vmul.f32 %v3886_v19, %v3886_v19 }
0x12ba   :  { %v3887_v20 = vmul.f32 %v3885_v21, %v3885_v21 }
0x12bb   :  { %v3892_v38 = vsel %vm29_vm0, %v3888_v18, 0.0 }
0x12bc   :  { %3893 = vadd.xlane.f32.xlu1 %v3892_v38  ;;  %v3889_v39 = vsel %vm29_vm0, %v3887_v20, 0.0 }
0x12bd   :  { %3890 = vadd.xlane.f32.xlu0 %v3889_v39 }
0x1349   :  { %v3894_v22 = vpop.xlane.xlu1 %3893 }
0x134a   :  { %v3896_v1 = vmul.f32 0.03125, %v3894_v22  ;;  %v3891_v0 = vpop.xlane.xlu0 %3890 }
0x134b   :  { %v3895_v23 = vmul.f32 0.03125, %v3891_v0 }
0x134c   :  { %v3898_v24 = vadd.f32 1e-06, %v3896_v1 }
0x134d   :  { %v3897_v25 = vadd.f32 1e-06, %v3895_v23 }
0x134e   :  { %5397 = vrsqrt.f32 %v3898_v24 }
0x134f   :  { %5399 = vrsqrt.f32 %v3897_v25 }
0x1358   :  { %v5398_v29 = vpop.eup %5397 }
0x1359   :  { %v5400_v30 = vpop.eup %5399  ;;  %v3902_v43 = vmul.f32 %v5398_v29, %v3886_v19 }
0x135a   :  { %v3901_v32 = vmul.f32 %v5400_v30, %v3885_v21 }
0x135b   :  { %v3908_v45 = vmul.f32 %v3906_v28, %v3902_v43 }
0x135c   :  { %v3907_v15 = vmul.f32 %v3906_v28, %v3901_v32 }
0x135d   :  { %v3914_v46 = vadd.f32 %v3912_v41, %v3908_v45 }
0x135e   :  { %v3913_v47 = vadd.f32 %v3912_v41, %v3907_v15 }
0x135f   :  { %3916 = vst.msk [vmem:[#allocation2 + $0x8] sm:$0xff] %vm29_vm0, %v3914_v46 }
0x1360   :  { %3915 = vst.msk [vmem:[#allocation2] sm:$0xff] %vm29_vm0, %v3913_v47 }
0x1361   :  { %5420 = shalt.err (!%p5417_p4)
}
0x1362   :  { %s5421_s27 = scalar_lea.hbm %s6400_s3, 256 }
0x1363   :  { %p5422_p5 = scmp.ne.s32.totalorder %s6400_s3, %s5421_s27  ;;  %p5425_p6 = scmp.lt.u32.totalorder %s5421_s27, %s6400_s3 }
0x1365   :  { %p5427_p7 = pnand %p5425_p6, %p5422_p5 }
0x1367   :  { %5430 = shalt.err (!%p5427_p7)
}
0x1368   :  { %s5434_s5 = smov 128   ;;  %s5435_s6 = smov 8  }
0x1369   :  { %3928 = dma.vmem_to_hbm [thread:$0]  %s3923_s24, 256, %s6400_s3, [#allocation3], %s5434_s5, %s5434_s5, %s5435_s6  }
0x136a   :  { %5431 = dma.done.wait [#allocation3], 256  }
0x136b   :  { %5432 = vsyncadd [#allocation3], 4294967040 }
0x136c   :  { %3932 = vsyncpa [#allocation3], 1 }

</bundles_post_ra>
